<compile_context>
chip_gen: v7x
topology: tpu7x:2x2x1
jax: 0.10.0
libtpu: 0.0.40
codegen_flags: <defaults>
</compile_context>

<pallas_src>
import functools

import jax
import jax.numpy as jnp
from jax.experimental import pallas as pl
from jax.experimental.pallas import tpu as pltpu

_MiB = 1024 * 1024


def _round_up(x, m):
    return ((x + m - 1) // m) * m


def _vmem_budget_bytes():
    """Usable VMEM budget in bytes (leaves headroom for compiler scratch)."""
    cap = None
    try:
        cap = int(getattr(pltpu.get_tpu_info(), "vmem_capacity_bytes", 0)) or None
    except Exception:
        cap = None
    if cap is None:
        try:
            kind = jax.devices()[0].device_kind.lower()
            cap = 128 * _MiB if ("v5" in kind or "v6" in kind) else 64 * _MiB
        except Exception:
            cap = 64 * _MiB  # conservative (v7x per-TC VMEM)
    return max(32 * _MiB, int(cap * 0.75))


# -------------------- kernels --------------------


def _ffn_kernel_resident(x_ref, w1_ref, b1_ref, w2_ref, b2_ref, o_ref):
    """Weights fully resident in VMEM; 1-D grid over row tiles."""
    x = x_ref[...].astype(w1_ref.dtype)  # cast to bf16 in-kernel (no HBM pass)
    h = jnp.dot(x, w1_ref[...], preferred_element_type=jnp.float32)
    h = jnp.maximum(h + b1_ref[...].astype(jnp.float32), 0.0)  # ReLU in f32
    # Dropout(p) in eval mode == identity.
    out = jnp.dot(h.astype(w2_ref.dtype), w2_ref[...],
                  preferred_element_type=jnp.float32)
    o_ref[...] = (out + b2_ref[...].astype(jnp.float32)).astype(o_ref.dtype)


def _ffn_kernel_tiled(x_ref, w1_ref, b1_ref, w2_ref, b2_ref, o_ref, acc_ref):
    """Hidden dim tiled (grid axis 1); f32 accumulator with init/finalize."""
    j = pl.program_id(1)

    @pl.when(j == 0)
    def _init():
        acc_ref[...] = jnp.zeros_like(acc_ref)

    x = x_ref[...].astype(w1_ref.dtype)
    h = jnp.dot(x, w1_ref[...], preferred_element_type=jnp.float32)
    h = jnp.maximum(h + b1_ref[...].astype(jnp.float32), 0.0)
    # Dropout(p) in eval mode == identity.
    acc_ref[...] += jnp.dot(h.astype(w2_ref.dtype), w2_ref[...],
                            preferred_element_type=jnp.float32)

    @pl.when(j == pl.num_programs(1) - 1)
    def _store():
        o_ref[...] = (acc_ref[...] + b2_ref[...].astype(jnp.float32)).astype(o_ref.dtype)


# -------------------- VMEM footprint models & tile selection --------------------


def _resident_vmem(tm, E, H, xb, ob):
    return (2 * tm * E * xb            # x tile, double-buffered
            + 2 * tm * E * ob          # out tile, double-buffered
            + 2 * (E * H + H * E) * 2  # W1 + W2 bf16 (conservatively double-buffered)
            + 2 * (H + E) * 4          # biases
            + tm * H * 4 + tm * H * 2  # f32 hidden + bf16 recast temporaries
            + tm * E * 4)              # f32 output temporary


def _tiled_vmem(tm, th, E, H, xb, ob):
    return (2 * tm * E * xb + 2 * tm * E * ob
            + 2 * E * th * 2 + 2 * th * E * 2   # W1/W2 chunks, double-buffered bf16
            + 2 * (th + E) * 4                  # biases
            + tm * E * 4                        # f32 accumulator scratch
            + tm * th * 4 + tm * th * 2)        # hidden temporaries


def _choose_tiles(M, E, H, xb, ob, tm_req, th_req, budget, force_tiled):
    # Row tile: the knob that amortizes weight streaming.  Default 512.
    tm = 512 if tm_req is None else tm_req
    tm = max(8, _round_up(min(tm, _round_up(M, 8)), 8))

    if not force_tiled and _resident_vmem(tm, E, H, xb, ob) <= budget:
        return tm, None  # resident-weights fast path

    th_cands = []
    for c in ([th_req] if th_req is not None else []) + [1024, 512, 256, 128, H]:
        if c is not None and c % 128 == 0 and H % c == 0 and c not in th_cands:
            th_cands.append(c)
    tm_cands = []
    for c in (tm, max(tm // 2, 256), 256):
        c = max(8, _round_up(min(c, _round_up(M, 8)), 8))
        if c not in tm_cands:
            tm_cands.append(c)

    for cur_tm in tm_cands:
        for th in th_cands:
            if _tiled_vmem(cur_tm, th, E, H, xb, ob) <= budget:
                return cur_tm, th
    return tm_cands[-1], min(th_cands)


# -------------------- wrapper --------------------


@functools.partial(jax.jit, static_argnames=("tm", "th", "force_tiled"))
def feed_forward(x, w1, b1, w2, b2, *, tm=None, th=None, force_tiled=False):
    """x: [B, T, E] -> [B, T, E].  Weights stored as [in, out] (transpose of torch)."""
    B, T, E = x.shape
    H = w1.shape[1]  # 4 * E
    assert E % 128 == 0, "embed_size must be a multiple of 128 (lane-dense output)"
    assert H % 128 == 0

    # Accept torch-style 1-D biases; keep them f32 for the epilogue.
    b1 = b1.reshape(1, H).astype(jnp.float32)
    b2 = b2.reshape(1, E).astype(jnp.float32)
    # Weights should already be bf16 (see prepare_params); astype is then a no-op.
    w1 = w1.astype(jnp.bfloat16)
    w2 = w2.astype(jnp.bfloat16)

    M = B * T
    out_dtype = x.dtype
    xb = jnp.dtype(x.dtype).itemsize
    ob = jnp.dtype(out_dtype).itemsize

    budget = _vmem_budget_bytes()
    tm_, th_ = _choose_tiles(M, E, H, xb, ob, tm, th, budget, force_tiled)

    Mp = _round_up(M, tm_)
    x2d = x.reshape(M, E)
    if Mp != M:
        # TODO(synk): handle the ragged tail in-kernel with a masked store instead
        # of a wrapper-side pad (extra HBM pass when M is far from a tm multiple).
        x2d = jnp.pad(x2d, ((0, Mp - M), (0, 0)))

    if th_ is None:
        # Resident-weights fast path: weights DMA'd once, no accumulator traffic.
        need = _resident_vmem(tm_, E, H, xb, ob)
        grid_spec = pltpu.PrefetchScalarGridSpec(
            num_scalar_prefetch=0,
            grid=(Mp // tm_,),
            in_specs=[
                pl.BlockSpec((tm_, E), lambda i: (i, 0)),   # x row tile
                pl.BlockSpec((E, H), lambda i: (0, 0)),     # W1 resident
                pl.BlockSpec((1, H), lambda i: (0, 0)),     # b1 resident
                pl.BlockSpec((H, E), lambda i: (0, 0)),     # W2 resident
                pl.BlockSpec((1, E), lambda i: (0, 0)),     # b2 resident
            ],
            out_specs=pl.BlockSpec((tm_, E), lambda i: (i, 0)),
        )
        kernel = _ffn_kernel_resident
        # TODO(synk): pltpu.CORE_PARALLEL on the row axis would split work across
        # both v7x TensorCores; kept "parallel" here for cross-generation safety.
        dims = ("parallel",)
    else:
        # Hidden-tiled path for large E (weights do not fit VMEM).
        need = _tiled_vmem(tm_, th_, E, H, xb, ob)
        grid_spec = pltpu.PrefetchScalarGridSpec(
            num_scalar_prefetch=0,
            grid=(Mp // tm_, H // th_),
            in_specs=[
                pl.BlockSpec((tm_, E), lambda i, j: (i, 0)),   # x row tile (const over j)
                pl.BlockSpec((E, th_), lambda i, j: (0, j)),   # W1 hidden chunk
                pl.BlockSpec((1, th_), lambda i, j: (0, j)),   # b1 hidden chunk
                pl.BlockSpec((th_, E), lambda i, j: (j, 0)),   # W2 hidden chunk
                pl.BlockSpec((1, E), lambda i, j: (0, 0)),     # b2 resident
            ],
            out_specs=pl.BlockSpec((tm_, E), lambda i, j: (i, 0)),
            scratch_shapes=[pltpu.VMEM((tm_, E), jnp.float32)],
        )
        kernel = _ffn_kernel_tiled
        dims = ("parallel", "arbitrary")

    vmem_limit = int(min(budget, max(2 * need, 32 * _MiB)))

    out2d = pl.pallas_call(
        kernel,
        out_shape=jax.ShapeDtypeStruct((Mp, E), out_dtype),
        grid_spec=grid_spec,
        compiler_params=pltpu.CompilerParams(
            dimension_semantics=dims,
            vmem_limit_bytes=vmem_limit,
        ),
    )(x2d, w1, b1, w2, b2)

    return out2d[:M].reshape(B, T, E)


# -------------------- params --------------------


def init_params(key, embed_size, dtype=jnp.float32):
    """Deterministic init mimicking nn.Linear (uniform +-1/sqrt(fan_in))."""
    hidden = 4 * embed_size
    k1, k2, k3, k4 = jax.random.split(key, 4)
    bound1 = 1.0 / (embed_size ** 0.5)
    bound2 = 1.0 / (hidden ** 0.5)
    # Stored as [in, out] (transpose of torch's [out, in]); forward math identical.
    w1 = jax.random.uniform(k1, (embed_size, hidden), dtype, -bound1, bound1)
    b1 = jax.random.uniform(k2, (hidden,), dtype, -bound1, bound1)
    w2 = jax.random.uniform(k3, (hidden, embed_size), dtype, -bound2, bound2)
    b2 = jax.random.uniform(k4, (embed_size,), dtype, -bound2, bound2)
    return w1, b1, w2, b2


def prepare_params(w1, b1, w2, b2):
    """One-time cast OUTSIDE the jitted call: bf16 weights, f32 2-D biases."""
    return (w1.astype(jnp.bfloat16), b1.reshape(1, -1).astype(jnp.float32),
            w2.astype(jnp.bfloat16), b2.reshape(1, -1).astype(jnp.float32))


if __name__ == "__main__":
    # Small but tiling-exercising shapes: E multiple of 128, M = B*T = 512.
    B, T, E = 2, 256, 128  # hidden = 4*E = 512
    key = jax.random.PRNGKey(0)
    kx, kp = jax.random.split(key)
    x = jax.random.normal(kx, (B, T, E), jnp.float32)
    w1_f, b1_f, w2_f, b2_f = init_params(kp, E)
    w1, b1, w2, b2 = prepare_params(w1_f, b1_f, w2_f, b2_f)  # cast once, outside jit

    # Resident-weights fast path (weights fit VMEM -> 1-D row grid).
    out = feed_forward(x, w1, b1, w2, b2)
    # Hidden-tiled fallback path, exercised explicitly (auto-selected for large E).
    out_tiled = feed_forward(x, w1, b1, w2, b2, th=256, force_tiled=True)
    jax.block_until_ready((out, out_tiled))

    # Reference with the same bf16-operand / f32-accumulate recipe.
    xb = x.reshape(-1, E).astype(jnp.bfloat16)
    h_ref = jnp.dot(xb, w1, preferred_element_type=jnp.float32) + b1
    h_ref = jnp.maximum(h_ref, 0.0)  # Dropout in eval mode == identity
    ref = jnp.dot(h_ref.astype(jnp.bfloat16), w2,
                  preferred_element_type=jnp.float32) + b2
    ref = ref.reshape(B, T, E).astype(x.dtype)

    assert out.shape == (B, T, E)
    err_res = float(jnp.max(jnp.abs(out - ref)))
    err_til = float(jnp.max(jnp.abs(out_tiled - ref)))
    assert jnp.allclose(out, ref, atol=5e-3, rtol=5e-3), err_res
    assert jnp.allclose(out_tiled, ref, atol=5e-3, rtol=5e-3), err_til
    print("KERNEL_OK")
</pallas_src>

<mosaic_0001>
module attributes {stable_mosaic.version = 11 : i64} {
  func.func @_ffn_kernel_resident(%arg0: i32, %arg1: memref<512x128xf32, #tpu.memory_space<vmem>>, %arg2: memref<128x512xbf16, #tpu.memory_space<vmem>>, %arg3: memref<1x512xf32, #tpu.memory_space<vmem>>, %arg4: memref<512x128xbf16, #tpu.memory_space<vmem>>, %arg5: memref<1x128xf32, #tpu.memory_space<vmem>>, %arg6: memref<512x128xf32, #tpu.memory_space<vmem>>) attributes {dimension_semantics = [#tpu.dimension_semantics<parallel>], iteration_bounds = array<i64: 1>, scalar_prefetch = 0 : i64, scratch_operands = 0 : i64, tpu.core_type = #tpu.core_type<tc>, window_params = [{transform_indices = @transform_0, window_bounds = array<i64: 512, 128>}, {pipeline_mode = #tpu.pipeline_mode<synchronous>, transform_indices = @transform_1, window_bounds = array<i64: 128, 512>}, {pipeline_mode = #tpu.pipeline_mode<synchronous>, transform_indices = @transform_2, window_bounds = array<i64: 1, 512>}, {pipeline_mode = #tpu.pipeline_mode<synchronous>, transform_indices = @transform_3, window_bounds = array<i64: 512, 128>}, {pipeline_mode = #tpu.pipeline_mode<synchronous>, transform_indices = @transform_4, window_bounds = array<i64: 1, 128>}, {transform_indices = @transform_5, window_bounds = array<i64: 512, 128>}]} {
    %c0 = arith.constant 0 : index
    %c0_0 = arith.constant 0 : index
    %0 = vector.load %arg1[%c0, %c0_0] : memref<512x128xf32, #tpu.memory_space<vmem>>, vector<512x128xf32>
    %1 = arith.truncf %0 : vector<512x128xf32> to vector<512x128xbf16>
    %c0_1 = arith.constant 0 : index
    %c0_2 = arith.constant 0 : index
    %2 = vector.load %arg2[%c0_1, %c0_2] : memref<128x512xbf16, #tpu.memory_space<vmem>>, vector<128x512xbf16>
    %cst = arith.constant dense<0.000000e+00> : vector<512x512xf32>
    %3 = tpu.matmul %1, %2, %cst {dimension_numbers = #tpu.dot_dimension_numbers<[1], [0], [0], [1], [0, 0, 1, 1], [], []>} : vector<512x128xbf16>, vector<128x512xbf16>, vector<512x512xf32> -> vector<512x512xf32>
    %c0_3 = arith.constant 0 : index
    %c0_4 = arith.constant 0 : index
    %4 = vector.load %arg3[%c0_3, %c0_4] : memref<1x512xf32, #tpu.memory_space<vmem>>, vector<1x512xf32>
    %5 = vector.broadcast %4 : vector<1x512xf32> to vector<512x512xf32>
    %6 = arith.addf %3, %5 : vector<512x512xf32>
    %cst_5 = arith.constant 0.000000e+00 : f32
    %7 = vector.broadcast %cst_5 : f32 to vector<512x512xf32>
    %8 = arith.maximumf %6, %7 : vector<512x512xf32>
    %9 = arith.truncf %8 : vector<512x512xf32> to vector<512x512xbf16>
    %c0_6 = arith.constant 0 : index
    %c0_7 = arith.constant 0 : index
    %10 = vector.load %arg4[%c0_6, %c0_7] : memref<512x128xbf16, #tpu.memory_space<vmem>>, vector<512x128xbf16>
    %cst_8 = arith.constant dense<0.000000e+00> : vector<512x128xf32>
    %11 = tpu.matmul %9, %10, %cst_8 {dimension_numbers = #tpu.dot_dimension_numbers<[1], [0], [0], [1], [0, 0, 1, 1], [], []>} : vector<512x512xbf16>, vector<512x128xbf16>, vector<512x128xf32> -> vector<512x128xf32>
    %c0_9 = arith.constant 0 : index
    %c0_10 = arith.constant 0 : index
    %12 = vector.load %arg5[%c0_9, %c0_10] : memref<1x128xf32, #tpu.memory_space<vmem>>, vector<1x128xf32>
    %13 = vector.broadcast %12 : vector<1x128xf32> to vector<512x128xf32>
    %14 = arith.addf %11, %13 : vector<512x128xf32>
    %c0_11 = arith.constant 0 : index
    %c0_12 = arith.constant 0 : index
    %15 = vector.load %arg6[%c0_11, %c0_12] : memref<512x128xf32, #tpu.memory_space<vmem>>, vector<512x128xf32>
    tpu.vector_store %arg6[%c0_11, %c0_12], %14 {strides = array<i32>} : memref<512x128xf32, #tpu.memory_space<vmem>>, vector<512x128xf32>,
    return
  }
  func.func @transform_0(%arg0: i32) -> (i32, i32) {
    %c0_i32 = arith.constant 0 : i32
    %c0_i32_0 = arith.constant 0 : i32
    return %arg0, %c0_i32 : i32, i32
  }
  func.func @transform_1(%arg0: i32) -> (i32, i32) {
    %c0_i32 = arith.constant 0 : i32
    %c0_i32_0 = arith.constant 0 : i32
    %c0_i32_1 = arith.constant 0 : i32
    return %c0_i32, %c0_i32_0 : i32, i32
  }
  func.func @transform_2(%arg0: i32) -> (i32, i32) {
    %c0_i32 = arith.constant 0 : i32
    %c0_i32_0 = arith.constant 0 : i32
    %c0_i32_1 = arith.constant 0 : i32
    return %c0_i32, %c0_i32_0 : i32, i32
  }
  func.func @transform_3(%arg0: i32) -> (i32, i32) {
    %c0_i32 = arith.constant 0 : i32
    %c0_i32_0 = arith.constant 0 : i32
    %c0_i32_1 = arith.constant 0 : i32
    return %c0_i32, %c0_i32_0 : i32, i32
  }
  func.func @transform_4(%arg0: i32) -> (i32, i32) {
    %c0_i32 = arith.constant 0 : i32
    %c0_i32_0 = arith.constant 0 : i32
    %c0_i32_1 = arith.constant 0 : i32
    return %c0_i32, %c0_i32_0 : i32, i32
  }
  func.func @transform_5(%arg0: i32) -> (i32, i32) {
    %c0_i32 = arith.constant 0 : i32
    %c0_i32_0 = arith.constant 0 : i32
    return %arg0, %c0_i32 : i32, i32
  }
}

</mosaic_0001>

<bundles_post_ra>
// kernel: feed_forward.1
= control target key start
LH: loop header
LB: loop body
LE: loop exit
PB: predicated region body
PF: predicated region fallthrough
CT: control target
= control target key end

     0   :  { %10 = vsyncpa [#allocation3], 0  ;;  %s3675_s0 = inlined_call_operand.hbm [shape: f32[512,128], index: 0, kind: input, shape index: {}]   ;;  %s3676_s1 = inlined_call_operand.hbm [shape: bf16[128,512], index: 1, kind: input, shape index: {}]   ;;  %s3677_s2 = inlined_call_operand.vmem [shape: f32[1,512], index: 2, kind: input, shape index: {}]   ;;  %s3678_s3 = inlined_call_operand.hbm [shape: bf16[512,128], index: 3, kind: input, shape index: {}]   ;;  %s3679_s4 = inlined_call_operand.vmem [shape: f32[1,128], index: 4, kind: input, shape index: {}]   ;;  %s3680_s5 = inlined_call_operand.hbm [shape: f32[512,128], index: 5, kind: output, shape index: {}]  }
   0x1   :  { %11 = vsyncpa [#allocation6], 0 }
   0x2   :  { %12 = vsyncpa [#allocation4], 0  ;;  %s2764_s18 = smov [#allocation5]   ;;  %s2670_s22 = scalar_lea.hbm %s3676_s1, 4096 }
   0x3   :  { %s30_s19 = sshll.u32 %s2764_s18, 4  ;;  %p2671_p0 = scmp.ne.s32.totalorder %s3676_s1, %s2670_s22  ;;  %s31_s19 = int_to_ptr.vmem [resolvable:$true] %s30_s19 }
   0x4   :  { %p2674_p1 = scmp.lt.u32.totalorder %s2670_s22, %s3676_s1 }
   0x6   :  { %p2676_p2 = pnand %p2674_p1, %p2671_p0 }
   0x8   :  { %2679 = shalt.err (!%p2676_p2)
}
   0x9   :  { %s2680_s27 = scalar_lea.vmem %s31_s19, 4096  ;;  %p2685_p4 = scmp.lt.s32.totalorder %s31_s19, %s31_s19 }
   0xa   :  { %p2681_p3 = scmp.ne.s32.totalorder %s31_s19, %s2680_s27  ;;  %p2686_p5 = scmp.lt.s32.totalorder %s2680_s27, %s2680_s27 }
   0xc   :  { %p2687_p6 = por %p2686_p5, %p2685_p4 }
   0xe   :  { %p2688_p7 = pnand %p2687_p6, %p2681_p3 }
  0x10   :  { %2691 = shalt.err (!%p2688_p7)
}
  0x11   :  { %s2765_s28 = smov 256   ;;  %s2766_s29 = smov 16  }
  0x12   :  { %36 = dma.hbm_to_vmem [thread:$0]  %s3676_s1, 4096, %s31_s19, [#allocation6], %s2765_s28, %s2765_s28, %s2766_s29  }
  0x13   :  { %s2767_s7 = smov [#allocation2]   ;;  %s2692_s11 = scalar_lea.hbm %s3675_s0, 8192 }
  0x14   :  { %s18_s8 = sshll.u32 %s2767_s7, 4  ;;  %p2693_p8 = scmp.ne.s32.totalorder %s3675_s0, %s2692_s11  ;;  %s19_s8 = int_to_ptr.vmem [resolvable:$true] %s18_s8 }
  0x15   :  { %p2696_p9 = scmp.lt.u32.totalorder %s2692_s11, %s3675_s0 }
  0x17   :  { %p2698_p10 = pnand %p2696_p9, %p2693_p8 }
  0x19   :  { %2701 = shalt.err (!%p2698_p10)
}
  0x1a   :  { %s2702_s16 = scalar_lea.vmem %s19_s8, 8192  ;;  %p2707_p12 = scmp.lt.s32.totalorder %s19_s8, %s19_s8 }
  0x1b   :  { %p2703_p11 = scmp.ne.s32.totalorder %s19_s8, %s2702_s16  ;;  %p2708_p13 = scmp.lt.s32.totalorder %s2702_s16, %s2702_s16 }
  0x1d   :  { %p2709_p0 = por %p2708_p13, %p2707_p12 }
  0x1f   :  { %p2710_p1 = pnand %p2709_p0, %p2703_p11 }
  0x21   :  { %2713 = shalt.err (!%p2710_p1)
}
  0x22   :  { %s2768_s1 = smov 128   ;;  %s2769_s17 = smov 8  }
  0x23   :  { %24 = dma.hbm_to_vmem [thread:$0]  %s3675_s0, 8192, %s19_s8, [#allocation3], %s2768_s1, %s2768_s1, %s2769_s17  }
  0x24   :  { %s2770_s20 = smov [#allocation7]   ;;  %s2714_s24 = scalar_lea.hbm %s3678_s3, 4096 }
  0x25   :  { %s44_s21 = sshll.u32 %s2770_s20, 4  ;;  %p2715_p2 = scmp.ne.s32.totalorder %s3678_s3, %s2714_s24  ;;  %s45_s21 = int_to_ptr.vmem [resolvable:$true] %s44_s21 }
  0x26   :  { %p2718_p3 = scmp.lt.u32.totalorder %s2714_s24, %s3678_s3 }
  0x28   :  { %p2720_p4 = pnand %p2718_p3, %p2715_p2 }
  0x2a   :  { %2723 = shalt.err (!%p2720_p4)
}
  0x2b   :  { %s2724_s29 = scalar_lea.vmem %s45_s21, 4096  ;;  %p2729_p6 = scmp.lt.s32.totalorder %s45_s21, %s45_s21 }
  0x2c   :  { %p2725_p5 = scmp.ne.s32.totalorder %s45_s21, %s2724_s29  ;;  %p2730_p7 = scmp.lt.s32.totalorder %s2724_s29, %s2724_s29 }
  0x2e   :  { %p2731_p8 = por %p2730_p7, %p2729_p6 }
  0x30   :  { %p2732_p9 = pnand %p2731_p8, %p2725_p5 }
  0x32   :  { %2735 = shalt.err (!%p2732_p9)
}
  0x33   :  { %s2771_s0 = smov 64   ;;  %s2772_s30 = smov 4  }
  0x34   :  { %50 = dma.hbm_to_vmem [thread:$0]  %s3678_s3, 4096, %s45_s21, [#allocation6], %s2771_s0, %s2771_s0, %s2772_s30  }
  0x35   :  { %2758 = dma.done.wait [#allocation3], 8192  }
  0x36   :  { %2759 = vsyncadd [#allocation3], 4294959104 }
  0x37   :  { %2760 = dma.done.wait [#allocation6], 8192  }
  0x38   :  { %2761 = vsyncadd [#allocation6], 4294959104  ;;  %v2773_v0 = vmov 0   ;;  %v2590_v1 = vld [vmem:[#allocation5 + $0x4] ss:$16 sps:$4 sm:$0xff]   ;;  %v64_v34 = vld [vmem:[#allocation2 + $0x8] sm:$0xff] }
  0x39   :  { %405 = vmatprep.mubr.bf16.mxu0 %v2773_v0  ;;  %758 = vmatprep.mubr.bf16.mxu1 %v2773_v0  ;;  %v2592_v2 = vld [vmem:[#allocation5 + $0xc] ss:$16 sps:$4 sm:$0xff]   ;;  %v2594_v3 = vld [vmem:[#allocation5] ss:$16 sps:$4 sm:$0xff]   ;;  %v2595_v4 = vld [vmem:[#allocation5 + $0x8] ss:$16 sps:$4 sm:$0xff]  }
  0x3a   :  { %373 = vmatprep.subr.bf16.mxu0 %v2590_v1  ;;  %726 = vmatprep.subr.bf16.mxu1 %v2592_v2  ;;  %v2596_v5 = vld [vmem:[#allocation5 + $0x24] ss:$16 sps:$4 sm:$0xff]   ;;  %v2598_v6 = vld [vmem:[#allocation5 + $0x2c] ss:$16 sps:$4 sm:$0xff]   ;;  %v2600_v7 = vld [vmem:[#allocation5 + $0x20] ss:$16 sps:$4 sm:$0xff]  }
  0x3b   :  { %374 = vmatpush1.bf16.msra.mxu0 %v2594_v3  ;;  %727 = vmatpush1.bf16.msra.mxu1 %v2595_v4  ;;  %v2601_v8 = vld [vmem:[#allocation5 + $0x28] ss:$16 sps:$4 sm:$0xff]   ;;  %v2602_v9 = vld [vmem:[#allocation5 + $0x44] ss:$16 sps:$4 sm:$0xff]   ;;  %v2604_v10 = vld [vmem:[#allocation5 + $0x4c] ss:$16 sps:$4 sm:$0xff]  }
  0x3c   :  { %375 = vmatprep.subr.bf16.mxu0 %v2596_v5  ;;  %728 = vmatprep.subr.bf16.mxu1 %v2598_v6  ;;  %v2606_v11 = vld [vmem:[#allocation5 + $0x40] ss:$16 sps:$4 sm:$0xff]   ;;  %v2607_v12 = vld [vmem:[#allocation5 + $0x48] ss:$16 sps:$4 sm:$0xff]   ;;  %v2608_v13 = vld [vmem:[#allocation5 + $0x64] ss:$16 sps:$4 sm:$0xff]  }
  0x3d   :  { %v2610_v14 = vld [vmem:[#allocation5 + $0x6c] ss:$16 sps:$4 sm:$0xff]   ;;  %v2612_v15 = vld [vmem:[#allocation5 + $0x60] ss:$16 sps:$4 sm:$0xff]   ;;  %v2613_v16 = vld [vmem:[#allocation5 + $0x68] ss:$16 sps:$4 sm:$0xff]  }
  0x3e   :  { %v2614_v17 = vld [vmem:[#allocation5 + $0x84] ss:$16 sps:$4 sm:$0xff]   ;;  %v2616_v18 = vld [vmem:[#allocation5 + $0x8c] ss:$16 sps:$4 sm:$0xff]   ;;  %v2618_v19 = vld [vmem:[#allocation5 + $0x80] ss:$16 sps:$4 sm:$0xff]  }
  0x3f   :  { %376 = vmatpush1.bf16.msra.mxu0 %v2600_v7  ;;  %729 = vmatpush1.bf16.msra.mxu1 %v2601_v8  ;;  %v2619_v20 = vld [vmem:[#allocation5 + $0x88] ss:$16 sps:$4 sm:$0xff]   ;;  %v2620_v21 = vld [vmem:[#allocation5 + $0xa4] ss:$16 sps:$4 sm:$0xff]   ;;  %v2622_v22 = vld [vmem:[#allocation5 + $0xac] ss:$16 sps:$4 sm:$0xff]  }
  0x40   :  { %377 = vmatprep.subr.bf16.mxu0 %v2602_v9  ;;  %730 = vmatprep.subr.bf16.mxu1 %v2604_v10  ;;  %v2624_v23 = vld [vmem:[#allocation5 + $0xa0] ss:$16 sps:$4 sm:$0xff]   ;;  %v2625_v24 = vld [vmem:[#allocation5 + $0xa8] ss:$16 sps:$4 sm:$0xff]   ;;  %v2626_v25 = vld [vmem:[#allocation5 + $0xc4] ss:$16 sps:$4 sm:$0xff]  }
  0x41   :  { %v2628_v26 = vld [vmem:[#allocation5 + $0xcc] ss:$16 sps:$4 sm:$0xff]   ;;  %v2630_v27 = vld [vmem:[#allocation5 + $0xc0] ss:$16 sps:$4 sm:$0xff]   ;;  %v2631_v28 = vld [vmem:[#allocation5 + $0xc8] ss:$16 sps:$4 sm:$0xff]  }
  0x42   :  { %v2632_v29 = vld [vmem:[#allocation5 + $0xe4] ss:$16 sps:$4 sm:$0xff]   ;;  %v2634_v30 = vld [vmem:[#allocation5 + $0xec] ss:$16 sps:$4 sm:$0xff]   ;;  %v2636_v31 = vld [vmem:[#allocation5 + $0xe0] ss:$16 sps:$4 sm:$0xff]  }
  0x43   :  { %378 = vmatpush1.bf16.msra.mxu0 %v2606_v11  ;;  %731 = vmatpush1.bf16.msra.mxu1 %v2607_v12  ;;  %v2637_v32 = vld [vmem:[#allocation5 + $0xe8] ss:$16 sps:$4 sm:$0xff]   ;;  %v63_v33 = vld [vmem:[#allocation2] sm:$0xff]  ;;  %v65_v38 = vld [vmem:[#allocation2 + $0x10] sm:$0xff] }
  0x44   :  { %379 = vmatprep.subr.bf16.mxu0 %v2608_v13  ;;  %732 = vmatprep.subr.bf16.mxu1 %v2610_v14  ;;  %v127_v35 = vpack.c.bf16 %v64_v34, %v63_v33  ;;  %v2638_v36 = vld [vmem:[#allocation7] sm:$0xff]   ;;  %v66_v39 = vld [vmem:[#allocation2 + $0x18] sm:$0xff]  ;;  %v2640_v40 = vld [vmem:[#allocation7 + $0x8] sm:$0xff]  }
  0x45   :  { %v2639_v37 = vld [vmem:[#allocation7 + $0x80] sm:$0xff]   ;;  %v2641_v41 = vld [vmem:[#allocation7 + $0x88] sm:$0xff]   ;;  %v128_v42 = vpack.c.bf16 %v66_v39, %v65_v38  ;;  %v2642_v43 = vld [vmem:[#allocation7 + $0x10] sm:$0xff]  }
  0x46   :  { %v2643_v44 = vld [vmem:[#allocation7 + $0x90] sm:$0xff]   ;;  %v67_v45 = vld [vmem:[#allocation2 + $0x20] sm:$0xff]  ;;  %v68_v46 = vld [vmem:[#allocation2 + $0x28] sm:$0xff] }
  0x47   :  { %380 = vmatpush1.bf16.msra.mxu0 %v2612_v15  ;;  %733 = vmatpush1.bf16.msra.mxu1 %v2613_v16  ;;  %v2644_v47 = vld [vmem:[#allocation7 + $0x18] sm:$0xff]   ;;  %v129_v49 = vpack.c.bf16 %v68_v46, %v67_v45  ;;  %v2646_v50 = vld [vmem:[#allocation7 + $0x20] sm:$0xff]   ;;  %v69_v52 = vld [vmem:[#allocation2 + $0x30] sm:$0xff] }
  0x48   :  { %381 = vmatprep.subr.bf16.mxu0 %v2614_v17  ;;  %734 = vmatprep.subr.bf16.mxu1 %v2616_v18  ;;  %v2645_v48 = vld [vmem:[#allocation7 + $0x98] sm:$0xff]   ;;  %v2647_v51 = vld [vmem:[#allocation7 + $0xa0] sm:$0xff]   ;;  %v2648_v54 = vld [vmem:[#allocation7 + $0x28] sm:$0xff]  }
  0x49   :  { %v70_v53 = vld [vmem:[#allocation2 + $0x38] sm:$0xff]  ;;  %v2649_v55 = vld [vmem:[#allocation7 + $0xa8] sm:$0xff]   ;;  %v2650_v57 = vld [vmem:[#allocation7 + $0x30] sm:$0xff]  }
  0x4a   :  { %v130_v56 = vpack.c.bf16 %v70_v53, %v69_v52  ;;  %v2651_v58 = vld [vmem:[#allocation7 + $0xb0] sm:$0xff]   ;;  %v71_v59 = vld [vmem:[#allocation2 + $0x40] sm:$0xff]  ;;  %v72_v60 = vld [vmem:[#allocation2 + $0x48] sm:$0xff] }
  0x4b   :  { %382 = vmatpush1.bf16.msra.mxu0 %v2618_v19  ;;  %735 = vmatpush1.bf16.msra.mxu1 %v2619_v20  ;;  %v2652_v61 = vld [vmem:[#allocation7 + $0x38] sm:$0xff]   ;;  %v131_v63 = vpack.c.bf16 %v72_v60, %v71_v59  ;;  %v2654_v1 = vld [vmem:[#allocation7 + $0x40] sm:$0xff]   ;;  %v73_v3 = vld [vmem:[#allocation2 + $0x50] sm:$0xff] }
  0x4c   :  { %383 = vmatprep.subr.bf16.mxu0 %v2620_v21  ;;  %736 = vmatprep.subr.bf16.mxu1 %v2622_v22  ;;  %v2653_v62 = vld [vmem:[#allocation7 + $0xb8] sm:$0xff]   ;;  %v2655_v2 = vld [vmem:[#allocation7 + $0xc0] sm:$0xff]   ;;  %v2656_v5 = vld [vmem:[#allocation7 + $0x48] sm:$0xff]  }
  0x4d   :  { %v74_v4 = vld [vmem:[#allocation2 + $0x58] sm:$0xff]  ;;  %v2657_v6 = vld [vmem:[#allocation7 + $0xc8] sm:$0xff]   ;;  %v2658_v8 = vld [vmem:[#allocation7 + $0x50] sm:$0xff]  }
  0x4e   :  { %v132_v7 = vpack.c.bf16 %v74_v4, %v73_v3  ;;  %v2659_v9 = vld [vmem:[#allocation7 + $0xd0] sm:$0xff]   ;;  %v75_v10 = vld [vmem:[#allocation2 + $0x60] sm:$0xff]  ;;  %v76_v11 = vld [vmem:[#allocation2 + $0x68] sm:$0xff] }
  0x4f   :  { %384 = vmatpush1.bf16.msra.mxu0 %v2624_v23  ;;  %737 = vmatpush1.bf16.msra.mxu1 %v2625_v24  ;;  %v133_v12 = vpack.c.bf16 %v76_v11, %v75_v10  ;;  %v2660_v13 = vld [vmem:[#allocation7 + $0x58] sm:$0xff]   ;;  %v77_v15 = vld [vmem:[#allocation2 + $0x70] sm:$0xff]  ;;  %v79_v18 = vld [vmem:[#allocation2 + $0x80] sm:$0xff] }
  0x50   :  { %385 = vmatprep.subr.bf16.mxu0 %v2626_v25  ;;  %738 = vmatprep.subr.bf16.mxu1 %v2628_v26  ;;  %v2661_v14 = vld [vmem:[#allocation7 + $0xd8] sm:$0xff]   ;;  %v80_v19 = vld [vmem:[#allocation2 + $0x88] sm:$0xff]  ;;  %v2662_v21 = vld [vmem:[#allocation7 + $0x60] sm:$0xff]  }
  0x51   :  { %v78_v16 = vld [vmem:[#allocation2 + $0x78] sm:$0xff]  ;;  %v135_v20 = vpack.c.bf16 %v80_v19, %v79_v18  ;;  %v2663_v22 = vld [vmem:[#allocation7 + $0xe0] sm:$0xff]   ;;  %v81_v23 = vld [vmem:[#allocation2 + $0x90] sm:$0xff] }
  0x52   :  { %v134_v17 = vpack.c.bf16 %v78_v16, %v77_v15  ;;  %v82_v24 = vld [vmem:[#allocation2 + $0x98] sm:$0xff]  ;;  %v83_v26 = vld [vmem:[#allocation2 + $0xa0] sm:$0xff]  ;;  %v2665_v33 = vld [vmem:[#allocation7 + $0xe8] sm:$0xff]  }
  0x53   :  { %386 = vmatpush1.bf16.msra.mxu0 %v2630_v27  ;;  %739 = vmatpush1.bf16.msra.mxu1 %v2631_v28  ;;  %v136_v25 = vpack.c.bf16 %v82_v24, %v81_v23  ;;  %v84_v27 = vld [vmem:[#allocation2 + $0xa8] sm:$0xff]  ;;  %v87_v34 = vld [vmem:[#allocation2 + $0xc0] sm:$0xff]  ;;  %v90_v38 = vld [vmem:[#allocation2 + $0xd8] sm:$0xff] }
  0x54   :  { %387 = vmatprep.subr.bf16.mxu0 %v2632_v29  ;;  %740 = vmatprep.subr.bf16.mxu1 %v2634_v30  ;;  %v137_v28 = vpack.c.bf16 %v84_v27, %v83_v26  ;;  %v2664_v29 = vld [vmem:[#allocation7 + $0x68] sm:$0xff]   ;;  %v85_v30 = vld [vmem:[#allocation2 + $0xb0] sm:$0xff]  ;;  %v94_v46 = vld [vmem:[#allocation2 + $0xf8] sm:$0xff] }
  0x55   :  { %v2666_v39 = vld [vmem:[#allocation7 + $0x70] sm:$0xff]   ;;  %v102_v60 = vld [vmem:[#allocation2 + $0x138] sm:$0xff]  ;;  %v111_v11 = vld [vmem:[#allocation2 + $0x180] sm:$0xff] }
  0x56   :  { %v93_v45 = vld [vmem:[#allocation2 + $0xf0] sm:$0xff]  ;;  %v106_v3 = vld [vmem:[#allocation2 + $0x158] sm:$0xff]  ;;  %v115_v19 = vld [vmem:[#allocation2 + $0x1a0] sm:$0xff] }
  0x57   :  { %388 = vmatpush1.bf16.msra.mxu0 %v2636_v31  ;;  %741 = vmatpush1.bf16.msra.mxu1 %v2637_v32  ;;  %v86_v31 = vld [vmem:[#allocation2 + $0xb8] sm:$0xff]  ;;  %v97_v53 = vld [vmem:[#allocation2 + $0x110] sm:$0xff]  ;;  %v191_v24 = vld [vmem:[%s3677_s2] sm:$0xf] }
  0x58   :  { %1726 = vmatprep.subr.bf16.mxu1 %v2773_v0  ;;  %2015 = vmatprep.subr.bf16.mxu0 %v2773_v0  ;;  %v138_v32 = vpack.c.bf16 %v86_v31, %v85_v30  ;;  %v101_v59 = vld [vmem:[#allocation2 + $0x130] sm:$0xff]  ;;  %v114_v15 = vld [vmem:[#allocation2 + $0x198] sm:$0xff] }
  0x59   :  { %v117_v31 = vld [vmem:[#allocation2 + $0x1b0] sm:$0xff] }
  0x5a   :  { %406 = vmatmul.mubr.bf16.vlgmr.msra.gmra.mrb[0].mxu0 %v127_v35  ;;  %759 = vmatmul.mubr.bf16.vlgmr.msra.gmra.mrb[0].mxu1 %v127_v35  ;;  %v88_v35 = vld [vmem:[#allocation2 + $0xc8] sm:$0xff] }
  0x5b   :  { %1727 = vmatpush1.bf16.msra.mxu1 %v2638_v36  ;;  %2016 = vmatpush1.bf16.msra.mxu0 %v2639_v37  ;;  %v139_v36 = vpack.c.bf16 %v88_v35, %v87_v34  ;;  %v89_v37 = vld [vmem:[#allocation2 + $0xd0] sm:$0xff] }
  0x5c   :  { %415 = vmatprep.mubr.bf16.mxu0 %v2773_v0  ;;  %768 = vmatprep.mubr.bf16.mxu1 %v2773_v0 }
  0x5d   :  { %1728 = vmatprep.subr.bf16.mxu1 %v2773_v0  ;;  %2017 = vmatprep.subr.bf16.mxu0 %v2773_v0 }
  0x5f   :  { %1729 = vmatpush1.bf16.msra.mxu1 %v2640_v40  ;;  %2018 = vmatpush1.bf16.msra.mxu0 %v2641_v41  ;;  %v140_v40 = vpack.c.bf16 %v90_v38, %v89_v37  ;;  %v2667_v41 = vld [vmem:[#allocation7 + $0xf0] sm:$0xff]  }
  0x60   :  { %1730 = vmatprep.subr.bf16.mxu1 %v2773_v0  ;;  %2019 = vmatprep.subr.bf16.mxu0 %v2773_v0 }
  0x62   :  { %416 = vmatmul.mubr.bf16.gmra.mrb[4].mxu0 %v128_v42  ;;  %769 = vmatmul.mubr.bf16.gmra.mrb[4].mxu1 %v128_v42  ;;  %v91_v42 = vld [vmem:[#allocation2 + $0xe0] sm:$0xff] }
  0x63   :  { %425 = vmatprep.mubr.bf16.mxu0 %v2773_v0  ;;  %778 = vmatprep.mubr.bf16.mxu1 %v2773_v0 }
  0x64   :  { %1731 = vmatpush1.bf16.msra.mxu1 %v2642_v43  ;;  %2020 = vmatpush1.bf16.msra.mxu0 %v2643_v44  ;;  %v92_v43 = vld [vmem:[#allocation2 + $0xe8] sm:$0xff] }
  0x65   :  { %1732 = vmatprep.subr.bf16.mxu1 %v2773_v0  ;;  %2021 = vmatprep.subr.bf16.mxu0 %v2773_v0  ;;  %v141_v44 = vpack.c.bf16 %v92_v43, %v91_v42 }
  0x68   :  { %1733 = vmatpush1.bf16.msra.mxu1 %v2644_v47  ;;  %2022 = vmatpush1.bf16.msra.mxu0 %v2645_v48  ;;  %v2668_v47 = vld [vmem:[#allocation7 + $0x78] sm:$0xff]   ;;  %v142_v48 = vpack.c.bf16 %v94_v46, %v93_v45 }
  0x69   :  { %1734 = vmatprep.subr.bf16.mxu1 %v2773_v0  ;;  %2023 = vmatprep.subr.bf16.mxu0 %v2773_v0 }
  0x6a   :  { %426 = vmatmul.mubr.bf16.gmra.mrb[8].mxu0 %v129_v49  ;;  %779 = vmatmul.mubr.bf16.gmra.mrb[8].mxu1 %v129_v49  ;;  %v2669_v49 = vld [vmem:[#allocation7 + $0xf8] sm:$0xff]  }
  0x6b   :  { %435 = vmatprep.mubr.bf16.mxu0 %v2773_v0  ;;  %788 = vmatprep.mubr.bf16.mxu1 %v2773_v0 }
  0x6c   :  { %1735 = vmatpush1.bf16.msra.mxu1 %v2646_v50  ;;  %2024 = vmatpush1.bf16.msra.mxu0 %v2647_v51  ;;  %v95_v50 = vld [vmem:[#allocation2 + $0x100] sm:$0xff]  ;;  %v96_v51 = vld [vmem:[#allocation2 + $0x108] sm:$0xff] }
  0x6d   :  { %1736 = vmatprep.subr.bf16.mxu1 %v2773_v0  ;;  %2025 = vmatprep.subr.bf16.mxu0 %v2773_v0  ;;  %v143_v52 = vpack.c.bf16 %v96_v51, %v95_v50 }
  0x70   :  { %1737 = vmatpush1.bf16.msra.mxu1 %v2648_v54  ;;  %2026 = vmatpush1.bf16.msra.mxu0 %v2649_v55  ;;  %v98_v54 = vld [vmem:[#allocation2 + $0x118] sm:$0xff] }
  0x71   :  { %1738 = vmatprep.subr.bf16.mxu1 %v2773_v0  ;;  %2027 = vmatprep.subr.bf16.mxu0 %v2773_v0  ;;  %v144_v55 = vpack.c.bf16 %v98_v54, %v97_v53 }
  0x72   :  { %436 = vmatmul.mubr.bf16.gmra.mrb[12].mxu0 %v130_v56  ;;  %789 = vmatmul.mubr.bf16.gmra.mrb[12].mxu1 %v130_v56  ;;  %v99_v56 = vld [vmem:[#allocation2 + $0x120] sm:$0xff] }
  0x73   :  { %445 = vmatprep.mubr.bf16.mxu0 %v2773_v0  ;;  %798 = vmatprep.mubr.bf16.mxu1 %v2773_v0 }
  0x74   :  { %1739 = vmatpush1.bf16.msra.mxu1 %v2650_v57  ;;  %2028 = vmatpush1.bf16.msra.mxu0 %v2651_v58  ;;  %v100_v57 = vld [vmem:[#allocation2 + $0x128] sm:$0xff] }
  0x75   :  { %1740 = vmatprep.subr.bf16.mxu1 %v2773_v0  ;;  %2029 = vmatprep.subr.bf16.mxu0 %v2773_v0  ;;  %v145_v58 = vpack.c.bf16 %v100_v57, %v99_v56 }
  0x78   :  { %1741 = vmatpush1.bf16.msra.mxu1 %v2652_v61  ;;  %2030 = vmatpush1.bf16.msra.mxu0 %v2653_v62  ;;  %v146_v61 = vpack.c.bf16 %v102_v60, %v101_v59  ;;  %v103_v62 = vld [vmem:[#allocation2 + $0x140] sm:$0xff]  ;;  %v120_v59 = vld [vmem:[#allocation2 + $0x1c8] sm:$0xff] }
  0x79   :  { %1742 = vmatprep.subr.bf16.mxu1 %v2773_v0  ;;  %2031 = vmatprep.subr.bf16.mxu0 %v2773_v0 }
  0x7a   :  { %446 = vmatmul.mubr.bf16.gmra.mrb[16].mxu0 %v131_v63  ;;  %799 = vmatmul.mubr.bf16.gmra.mrb[16].mxu1 %v131_v63  ;;  %v104_v63 = vld [vmem:[#allocation2 + $0x148] sm:$0xff] }
  0x7b   :  { %455 = vmatprep.mubr.bf16.mxu0 %v2773_v0  ;;  %808 = vmatprep.mubr.bf16.mxu1 %v2773_v0 }
  0x7c   :  { %1743 = vmatpush1.bf16.msra.mxu1 %v2654_v1  ;;  %2032 = vmatpush1.bf16.msra.mxu0 %v2655_v2  ;;  %v147_v1 = vpack.c.bf16 %v104_v63, %v103_v62  ;;  %v105_v2 = vld [vmem:[#allocation2 + $0x150] sm:$0xff] }
  0x7d   :  { %1744 = vmatprep.subr.bf16.mxu1 %v2773_v0  ;;  %2033 = vmatprep.subr.bf16.mxu0 %v2773_v0  ;;  %v148_v4 = vpack.c.bf16 %v106_v3, %v105_v2 }
  0x80   :  { %1745 = vmatpush1.bf16.msra.mxu1 %v2656_v5  ;;  %2034 = vmatpush1.bf16.msra.mxu0 %v2657_v6  ;;  %v107_v5 = vld [vmem:[#allocation2 + $0x160] sm:$0xff]  ;;  %v108_v6 = vld [vmem:[#allocation2 + $0x168] sm:$0xff] }
  0x81   :  { %1746 = vmatprep.subr.bf16.mxu1 %v2773_v0  ;;  %2035 = vmatprep.subr.bf16.mxu0 %v2773_v0 }
  0x82   :  { %456 = vmatmul.mubr.bf16.gmra.mrb[20].mxu0 %v132_v7  ;;  %809 = vmatmul.mubr.bf16.gmra.mrb[20].mxu1 %v132_v7  ;;  %v149_v7 = vpack.c.bf16 %v108_v6, %v107_v5 }
  0x83   :  { %465 = vmatprep.mubr.bf16.mxu0 %v2773_v0  ;;  %818 = vmatprep.mubr.bf16.mxu1 %v2773_v0 }
  0x84   :  { %1747 = vmatpush1.bf16.msra.mxu1 %v2658_v8  ;;  %2036 = vmatpush1.bf16.msra.mxu0 %v2659_v9  ;;  %v109_v8 = vld [vmem:[#allocation2 + $0x170] sm:$0xff]  ;;  %v110_v9 = vld [vmem:[#allocation2 + $0x178] sm:$0xff] }
  0x85   :  { %1748 = vmatprep.subr.bf16.mxu1 %v2773_v0  ;;  %2037 = vmatprep.subr.bf16.mxu0 %v2773_v0  ;;  %v150_v10 = vpack.c.bf16 %v110_v9, %v109_v8 }
  0x88   :  { %1749 = vmatpush1.bf16.msra.mxu1 %v2660_v13  ;;  %2038 = vmatpush1.bf16.msra.mxu0 %v2661_v14  ;;  %v113_v14 = vld [vmem:[#allocation2 + $0x190] sm:$0xff] }
  0x89   :  { %1750 = vmatprep.subr.bf16.mxu1 %v2773_v0  ;;  %2039 = vmatprep.subr.bf16.mxu0 %v2773_v0  ;;  %v152_v16 = vpack.c.bf16 %v114_v15, %v113_v14 }
  0x8a   :  { %466 = vmatmul.mubr.bf16.gmra.mrb[24].mxu0 %v133_v12  ;;  %819 = vmatmul.mubr.bf16.gmra.mrb[24].mxu1 %v133_v12  ;;  %v112_v12 = vld [vmem:[#allocation2 + $0x188] sm:$0xff] }
  0x8b   :  { %475 = vmatprep.mubr.bf16.mxu0 %v2773_v0  ;;  %828 = vmatprep.mubr.bf16.mxu1 %v2773_v0  ;;  %v151_v13 = vpack.c.bf16 %v112_v12, %v111_v11 }
  0x8c   :  { %1751 = vmatpush1.bf16.msra.mxu1 %v2662_v21  ;;  %2040 = vmatpush1.bf16.msra.mxu0 %v2663_v22 }
  0x8d   :  { %1752 = vmatprep.subr.bf16.mxu1 %v2773_v0  ;;  %2041 = vmatprep.subr.bf16.mxu0 %v2773_v0 }
  0x90   :  { %1753 = vmatpush1.bf16.msra.mxu1 %v2664_v29  ;;  %2042 = vmatpush1.bf16.msra.mxu0 %v2665_v33 }
  0x91   :  { %1754 = vmatprep.subr.bf16.mxu1 %v2773_v0  ;;  %2043 = vmatprep.subr.bf16.mxu0 %v2773_v0 }
  0x92   :  { %476 = vmatmul.mubr.bf16.gmra.mrb[28].mxu0 %v134_v17  ;;  %829 = vmatmul.mubr.bf16.gmra.mrb[28].mxu1 %v134_v17  ;;  %v193_v17 = vlaneseq }
  0x93   :  { %485 = vmatprep.mubr.bf16.mxu0 %v2773_v0  ;;  %838 = vmatprep.mubr.bf16.mxu1 %v2773_v0 }
  0x94   :  { %1755 = vmatpush1.bf16.msra.mxu1 %v2666_v39  ;;  %2044 = vmatpush1.bf16.msra.mxu0 %v2667_v41  ;;  %v194_v18 = vshrl.u32 %v193_v17, 7 }
  0x95   :  { %1756 = vmatprep.subr.bf16.mxu1 %v2773_v0  ;;  %2045 = vmatprep.subr.bf16.mxu0 %v2773_v0 }
  0x96   :  { %v195_v22 = vsub.s32 0, %v194_v18  ;;  %v203_v23 = vsub.s32 2, %v194_v18  ;;  %v207_v26 = vsub.s32 3, %v194_v18 }
  0x98   :  { %1757 = vmatpush1.bf16.msra.mxu1 %v2668_v47  ;;  %2046 = vmatpush1.bf16.msra.mxu0 %v2669_v49  ;;  %v2933_v27 = vrot.slane %v191_v24, %v195_v22  ;;  %v2939_v30 = vrot.slane %v191_v24, %v207_v26  ;;  %v121_v26 = vld [vmem:[#allocation2 + $0x1d0] sm:$0xff] }
  0x9a   :  { %486 = vmatmul.mubr.bf16.gmra.mrb[32].mxu0 %v135_v20  ;;  %839 = vmatmul.mubr.bf16.gmra.mrb[32].mxu1 %v135_v20  ;;  %v116_v20 = vld [vmem:[#allocation2 + $0x1a8] sm:$0xff] }
  0x9b   :  { %495 = vmatprep.mubr.bf16.mxu0 %v2773_v0  ;;  %848 = vmatprep.mubr.bf16.mxu1 %v2773_v0  ;;  %v153_v21 = vpack.c.bf16 %v116_v20, %v115_v19 }
  0xa2   :  { %496 = vmatmul.mubr.bf16.gmra.mrb[36].mxu0 %v136_v25  ;;  %849 = vmatmul.mubr.bf16.gmra.mrb[36].mxu1 %v136_v25  ;;  %v199_v25 = vsub.s32 1, %v194_v18 }
  0xa3   :  { %505 = vmatprep.mubr.bf16.mxu0 %v2773_v0  ;;  %858 = vmatprep.mubr.bf16.mxu1 %v2773_v0 }
  0xa4   :  { %v2937_v29 = vrot.slane %v191_v24, %v199_v25 }
  0xaa   :  { %506 = vmatmul.mubr.bf16.gmra.mrb[40].mxu0 %v137_v28  ;;  %859 = vmatmul.mubr.bf16.gmra.mrb[40].mxu1 %v137_v28  ;;  %v2935_v28 = vrot.slane %v191_v24, %v203_v23 }
  0xab   :  { %515 = vmatprep.mubr.bf16.mxu0 %v2773_v0  ;;  %868 = vmatprep.mubr.bf16.mxu1 %v2773_v0 }
  0xb2   :  { %516 = vmatmul.mubr.bf16.gmra.mrb[44].mxu0 %v138_v32  ;;  %869 = vmatmul.mubr.bf16.gmra.mrb[44].mxu1 %v138_v32  ;;  %v118_v32 = vld [vmem:[#allocation2 + $0x1b8] sm:$0xff] }
  0xb3   :  { %525 = vmatprep.mubr.bf16.mxu0 %v2773_v0  ;;  %878 = vmatprep.mubr.bf16.mxu1 %v2773_v0  ;;  %v154_v39 = vpack.c.bf16 %v118_v32, %v117_v31  ;;  %v122_v31 = vld [vmem:[#allocation2 + $0x1d8] sm:$0xff] }
  0xba   :  { %526 = vmatmul.mubr.bf16.gmra.mrb[48].mxu0 %v139_v36  ;;  %879 = vmatmul.mubr.bf16.gmra.mrb[48].mxu1 %v139_v36 }
  0xbb   :  { %535 = vmatprep.mubr.bf16.mxu0 %v2773_v0  ;;  %888 = vmatprep.mubr.bf16.mxu1 %v2773_v0 }
  0xc2   :  { %536 = vmatmul.mubr.bf16.gmra.mrb[52].mxu0 %v140_v40  ;;  %889 = vmatmul.mubr.bf16.gmra.mrb[52].mxu1 %v140_v40 }
  0xc3   :  { %545 = vmatprep.mubr.bf16.mxu0 %v2773_v0  ;;  %898 = vmatprep.mubr.bf16.mxu1 %v2773_v0 }
  0xca   :  { %546 = vmatmul.mubr.bf16.gmra.mrb[56].mxu0 %v141_v44  ;;  %899 = vmatmul.mubr.bf16.gmra.mrb[56].mxu1 %v141_v44 }
  0xcb   :  { %555 = vmatprep.mubr.bf16.mxu0 %v2773_v0  ;;  %908 = vmatprep.mubr.bf16.mxu1 %v2773_v0 }
  0xd2   :  { %556 = vmatmul.mubr.bf16.gmra.mrb[60].mxu0 %v142_v48  ;;  %909 = vmatmul.mubr.bf16.gmra.mrb[60].mxu1 %v142_v48 }
  0xd3   :  { %565 = vmatprep.mubr.bf16.mxu0 %v2773_v0  ;;  %918 = vmatprep.mubr.bf16.mxu1 %v2773_v0 }
  0xda   :  { %566 = vmatmul.mubr.bf16.gmra.mrb[64].mxu0 %v143_v52  ;;  %919 = vmatmul.mubr.bf16.gmra.mrb[64].mxu1 %v143_v52 }
  0xdb   :  { %575 = vmatprep.mubr.bf16.mxu0 %v2773_v0  ;;  %928 = vmatprep.mubr.bf16.mxu1 %v2773_v0 }
  0xe2   :  { %576 = vmatmul.mubr.bf16.gmra.mrb[68].mxu0 %v144_v55  ;;  %929 = vmatmul.mubr.bf16.gmra.mrb[68].mxu1 %v144_v55 }
  0xe3   :  { %585 = vmatprep.mubr.bf16.mxu0 %v2773_v0  ;;  %938 = vmatprep.mubr.bf16.mxu1 %v2773_v0 }
  0xea   :  { %586 = vmatmul.mubr.bf16.gmra.mrb[72].mxu0 %v145_v58  ;;  %939 = vmatmul.mubr.bf16.gmra.mrb[72].mxu1 %v145_v58  ;;  %v119_v58 = vld [vmem:[#allocation2 + $0x1c0] sm:$0xff] }
  0xeb   :  { %595 = vmatprep.mubr.bf16.mxu0 %v2773_v0  ;;  %948 = vmatprep.mubr.bf16.mxu1 %v2773_v0 }
  0xf2   :  { %596 = vmatmul.mubr.bf16.gmra.mrb[76].mxu0 %v146_v61  ;;  %949 = vmatmul.mubr.bf16.gmra.mrb[76].mxu1 %v146_v61 }
  0xf3   :  { %605 = vmatprep.mubr.bf16.mxu0 %v2773_v0  ;;  %958 = vmatprep.mubr.bf16.mxu1 %v2773_v0 }
  0xfa   :  { %606 = vmatmul.mubr.bf16.gmra.mrb[80].mxu0 %v147_v1  ;;  %959 = vmatmul.mubr.bf16.gmra.mrb[80].mxu1 %v147_v1 }
  0xfb   :  { %615 = vmatprep.mubr.bf16.mxu0 %v2773_v0  ;;  %968 = vmatprep.mubr.bf16.mxu1 %v2773_v0 }
 0x102   :  { %616 = vmatmul.mubr.bf16.gmra.mrb[84].mxu0 %v148_v4  ;;  %969 = vmatmul.mubr.bf16.gmra.mrb[84].mxu1 %v148_v4 }
 0x103   :  { %625 = vmatprep.mubr.bf16.mxu0 %v2773_v0  ;;  %978 = vmatprep.mubr.bf16.mxu1 %v2773_v0 }
 0x10a   :  { %626 = vmatmul.mubr.bf16.gmra.mrb[88].mxu0 %v149_v7  ;;  %979 = vmatmul.mubr.bf16.gmra.mrb[88].mxu1 %v149_v7  ;;  %v155_v7 = vpack.c.bf16 %v120_v59, %v119_v58 }
 0x10b   :  { %635 = vmatprep.mubr.bf16.mxu0 %v2773_v0  ;;  %988 = vmatprep.mubr.bf16.mxu1 %v2773_v0 }
 0x112   :  { %636 = vmatmul.mubr.bf16.gmra.mrb[92].mxu0 %v150_v10  ;;  %989 = vmatmul.mubr.bf16.gmra.mrb[92].mxu1 %v150_v10 }
 0x113   :  { %645 = vmatprep.mubr.bf16.mxu0 %v2773_v0  ;;  %998 = vmatprep.mubr.bf16.mxu1 %v2773_v0 }
 0x11a   :  { %646 = vmatmul.mubr.bf16.gmra.mrb[96].mxu0 %v151_v13  ;;  %999 = vmatmul.mubr.bf16.gmra.mrb[96].mxu1 %v151_v13 }
 0x11b   :  { %655 = vmatprep.mubr.bf16.mxu0 %v2773_v0  ;;  %1008 = vmatprep.mubr.bf16.mxu1 %v2773_v0 }
 0x122   :  { %656 = vmatmul.mubr.bf16.gmra.mrb[100].mxu0 %v152_v16  ;;  %1009 = vmatmul.mubr.bf16.gmra.mrb[100].mxu1 %v152_v16 }
 0x123   :  { %665 = vmatprep.mubr.bf16.mxu0 %v2773_v0  ;;  %1018 = vmatprep.mubr.bf16.mxu1 %v2773_v0 }
 0x12a   :  { %666 = vmatmul.mubr.bf16.gmra.mrb[104].mxu0 %v153_v21  ;;  %1019 = vmatmul.mubr.bf16.gmra.mrb[104].mxu1 %v153_v21 }
 0x12b   :  { %675 = vmatprep.mubr.bf16.mxu0 %v2773_v0  ;;  %1028 = vmatprep.mubr.bf16.mxu1 %v2773_v0 }
 0x12d   :  { %v407_v33 = vpop.f32.mrb[0].mxu0  ;;  %v760_v34 = vpop.f32.mrb[0].mxu1 }
 0x12e   :  { %v408_v35 = vadd.f32 %v407_v33, %v2933_v27  ;;  %v761_v36 = vadd.f32 %v760_v34, %v2935_v28  ;;  %v409_v37 = vpop.f32.mrb[1].mxu0  ;;  %v762_v38 = vpop.f32.mrb[1].mxu1 }
 0x12f   :  { %v410_v40 = vadd.f32 %v409_v37, %v2937_v29  ;;  %v763_v41 = vadd.f32 %v762_v38, %v2939_v30  ;;  %v411_v42 = vpop.f32.mrb[2].mxu0  ;;  %v764_v43 = vpop.f32.mrb[2].mxu1 }
 0x130   :  { %v1079_v44 = vmax.f32 %v408_v35, 0.0  ;;  %v412_v45 = vadd.f32 %v411_v42, %v2933_v27  ;;  %v765_v46 = vadd.f32 %v764_v43, %v2935_v28  ;;  %v413_v47 = vpop.f32.mrb[3].mxu0  ;;  %v766_v48 = vpop.f32.mrb[3].mxu1  ;;  %v1081_v52 = vmax.f32 %v761_v36, 0.0 }
 0x131   :  { %v1080_v49 = vmax.f32 %v410_v40, 0.0  ;;  %v414_v50 = vadd.f32 %v413_v47, %v2937_v29  ;;  %v767_v51 = vadd.f32 %v766_v48, %v2939_v30  ;;  %v1082_v55 = vmax.f32 %v763_v41, 0.0 }
 0x132   :  { %v1083_v53 = vmax.f32 %v412_v45, 0.0  ;;  %v1085_v54 = vmax.f32 %v765_v46, 0.0  ;;  %676 = vmatmul.mubr.bf16.gmra.mrb[108].mxu0 %v154_v39  ;;  %1029 = vmatmul.mubr.bf16.gmra.mrb[108].mxu1 %v154_v39  ;;  %v156_v42 = vpack.c.bf16 %v122_v31, %v121_v26 }
 0x133   :  { %v1084_v56 = vmax.f32 %v414_v50, 0.0  ;;  %v1086_v57 = vmax.f32 %v767_v51, 0.0  ;;  %685 = vmatprep.mubr.bf16.mxu0 %v2773_v0  ;;  %1038 = vmatprep.mubr.bf16.mxu1 %v2773_v0 }
 0x134   :  { %v2953_v60 = vpack.c.bf16 %v1083_v53, %v1079_v44  ;;  %v2955_v61 = vpack.c.bf16 %v1085_v54, %v1081_v52 }
 0x135   :  { %v2957_v62 = vpack.c.bf16 %v1084_v56, %v1080_v49  ;;  %v2959_v63 = vpack.c.bf16 %v1086_v57, %v1082_v55  ;;  %v417_v1 = vpop.f32.mrb[4].mxu0  ;;  %v770_v2 = vpop.f32.mrb[4].mxu1 }
 0x136   :  { %v418_v3 = vadd.f32 %v417_v1, %v2933_v27  ;;  %v771_v4 = vadd.f32 %v770_v2, %v2935_v28  ;;  %v419_v5 = vpop.f32.mrb[5].mxu0  ;;  %v772_v6 = vpop.f32.mrb[5].mxu1  ;;  %v123_v2 = vld [vmem:[#allocation2 + $0x1e0] sm:$0xff] }
 0x137   :  { %v420_v8 = vadd.f32 %v419_v5, %v2937_v29  ;;  %v773_v9 = vadd.f32 %v772_v6, %v2939_v30  ;;  %v421_v10 = vpop.f32.mrb[6].mxu0  ;;  %v774_v11 = vpop.f32.mrb[6].mxu1 }
 0x138   :  { %v1087_v12 = vmax.f32 %v418_v3, 0.0  ;;  %v422_v13 = vadd.f32 %v421_v10, %v2933_v27  ;;  %v775_v14 = vadd.f32 %v774_v11, %v2935_v28  ;;  %v423_v15 = vpop.f32.mrb[7].mxu0  ;;  %v776_v16 = vpop.f32.mrb[7].mxu1  ;;  %v1089_v20 = vmax.f32 %v771_v4, 0.0  ;;  %v124_v3 = vld [vmem:[#allocation2 + $0x1e8] sm:$0xff] }
 0x139   :  { %v1088_v17 = vmax.f32 %v420_v8, 0.0  ;;  %v424_v18 = vadd.f32 %v423_v15, %v2937_v29  ;;  %v777_v19 = vadd.f32 %v776_v16, %v2939_v30  ;;  %v1090_v23 = vmax.f32 %v773_v9, 0.0 }
 0x13a   :  { %v1091_v21 = vmax.f32 %v422_v13, 0.0  ;;  %v1093_v22 = vmax.f32 %v775_v14, 0.0  ;;  %686 = vmatmul.mubr.bf16.gmra.mrb[112].mxu0 %v155_v7  ;;  %1039 = vmatmul.mubr.bf16.gmra.mrb[112].mxu1 %v155_v7  ;;  %v157_v14 = vpack.c.bf16 %v124_v3, %v123_v2 }
 0x13b   :  { %v1092_v24 = vmax.f32 %v424_v18, 0.0  ;;  %v1094_v25 = vmax.f32 %v777_v19, 0.0  ;;  %695 = vmatprep.mubr.bf16.mxu0 %v2773_v0  ;;  %1048 = vmatprep.mubr.bf16.mxu1 %v2773_v0 }
 0x13c   :  { %v2971_v32 = vpack.c.bf16 %v1091_v21, %v1087_v12  ;;  %v2973_v33 = vpack.c.bf16 %v1093_v22, %v1089_v20 }
 0x13d   :  { %v2975_v34 = vpack.c.bf16 %v1092_v24, %v1088_v17  ;;  %v2977_v35 = vpack.c.bf16 %v1094_v25, %v1090_v23  ;;  %v427_v36 = vpop.f32.mrb[8].mxu0  ;;  %v780_v37 = vpop.f32.mrb[8].mxu1 }
 0x13e   :  { %v428_v38 = vadd.f32 %v427_v36, %v2933_v27  ;;  %v781_v39 = vadd.f32 %v780_v37, %v2935_v28  ;;  %v429_v40 = vpop.f32.mrb[9].mxu0  ;;  %v782_v41 = vpop.f32.mrb[9].mxu1 }
 0x13f   :  { %v430_v43 = vadd.f32 %v429_v40, %v2937_v29  ;;  %v783_v44 = vadd.f32 %v782_v41, %v2939_v30  ;;  %v431_v45 = vpop.f32.mrb[10].mxu0  ;;  %v784_v46 = vpop.f32.mrb[10].mxu1  ;;  %v125_v41 = vld [vmem:[#allocation2 + $0x1f0] sm:$0xff] }
 0x140   :  { %v1095_v47 = vmax.f32 %v428_v38, 0.0  ;;  %v432_v48 = vadd.f32 %v431_v45, %v2933_v27  ;;  %v785_v49 = vadd.f32 %v784_v46, %v2935_v28  ;;  %v433_v50 = vpop.f32.mrb[11].mxu0  ;;  %v786_v51 = vpop.f32.mrb[11].mxu1  ;;  %v1097_v55 = vmax.f32 %v781_v39, 0.0 }
 0x141   :  { %v1096_v52 = vmax.f32 %v430_v43, 0.0  ;;  %v434_v53 = vadd.f32 %v433_v50, %v2937_v29  ;;  %v787_v54 = vadd.f32 %v786_v51, %v2939_v30  ;;  %v1098_v58 = vmax.f32 %v783_v44, 0.0 }
 0x142   :  { %v1099_v56 = vmax.f32 %v432_v48, 0.0  ;;  %v1101_v57 = vmax.f32 %v785_v49, 0.0  ;;  %696 = vmatmul.mubr.bf16.gmra.mrb[116].mxu0 %v156_v42  ;;  %1049 = vmatmul.mubr.bf16.gmra.mrb[116].mxu1 %v156_v42  ;;  %v126_v42 = vld [vmem:[#allocation2 + $0x1f8] sm:$0xff] }
 0x143   :  { %v1100_v59 = vmax.f32 %v434_v53, 0.0  ;;  %v1102_v1 = vmax.f32 %v787_v54, 0.0  ;;  %705 = vmatprep.mubr.bf16.mxu0 %v2773_v0  ;;  %1058 = vmatprep.mubr.bf16.mxu1 %v2773_v0  ;;  %v158_v53 = vpack.c.bf16 %v126_v42, %v125_v41 }
 0x144   :  { %v2989_v4 = vpack.c.bf16 %v1099_v56, %v1095_v47  ;;  %v2991_v5 = vpack.c.bf16 %v1101_v57, %v1097_v55 }
 0x145   :  { %v2993_v6 = vpack.c.bf16 %v1100_v59, %v1096_v52  ;;  %v2995_v7 = vpack.c.bf16 %v1102_v1, %v1098_v58  ;;  %v437_v8 = vpop.f32.mrb[12].mxu0  ;;  %v790_v9 = vpop.f32.mrb[12].mxu1 }
 0x146   :  { %v438_v10 = vadd.f32 %v437_v8, %v2933_v27  ;;  %v791_v11 = vadd.f32 %v790_v9, %v2935_v28  ;;  %v439_v12 = vpop.f32.mrb[13].mxu0  ;;  %v792_v13 = vpop.f32.mrb[13].mxu1 }
 0x147   :  { %v440_v15 = vadd.f32 %v439_v12, %v2937_v29  ;;  %v793_v16 = vadd.f32 %v792_v13, %v2939_v30  ;;  %v441_v17 = vpop.f32.mrb[14].mxu0  ;;  %v794_v18 = vpop.f32.mrb[14].mxu1 }
 0x148   :  { %v1103_v19 = vmax.f32 %v438_v10, 0.0  ;;  %v442_v20 = vadd.f32 %v441_v17, %v2933_v27  ;;  %v795_v21 = vadd.f32 %v794_v18, %v2935_v28  ;;  %v443_v22 = vpop.f32.mrb[15].mxu0  ;;  %v796_v23 = vpop.f32.mrb[15].mxu1  ;;  %v1105_v31 = vmax.f32 %v791_v11, 0.0 }
 0x149   :  { %v1104_v24 = vmax.f32 %v440_v15, 0.0  ;;  %v444_v25 = vadd.f32 %v443_v22, %v2937_v29  ;;  %v797_v26 = vadd.f32 %v796_v23, %v2939_v30  ;;  %v1106_v38 = vmax.f32 %v793_v16, 0.0 }
 0x14a   :  { %v1107_v36 = vmax.f32 %v442_v20, 0.0  ;;  %v1109_v37 = vmax.f32 %v795_v21, 0.0  ;;  %706 = vmatmul.mubr.bf16.gmra.mrb[120].mxu0 %v157_v14  ;;  %1059 = vmatmul.mubr.bf16.gmra.mrb[120].mxu1 %v157_v14 }
 0x14b   :  { %v1108_v39 = vmax.f32 %v444_v25, 0.0  ;;  %v1110_v40 = vmax.f32 %v797_v26, 0.0  ;;  %715 = vmatprep.mubr.bf16.mxu0 %v2773_v0  ;;  %1068 = vmatprep.mubr.bf16.mxu1 %v2773_v0 }
 0x14c   :  { %v3007_v43 = vpack.c.bf16 %v1107_v36, %v1103_v19  ;;  %v3009_v44 = vpack.c.bf16 %v1109_v37, %v1105_v31 }
 0x14d   :  { %v3011_v45 = vpack.c.bf16 %v1108_v39, %v1104_v24  ;;  %v3013_v46 = vpack.c.bf16 %v1110_v40, %v1106_v38  ;;  %v447_v47 = vpop.f32.mrb[16].mxu0  ;;  %v800_v48 = vpop.f32.mrb[16].mxu1 }
 0x14e   :  { %v448_v49 = vadd.f32 %v447_v47, %v2933_v27  ;;  %v801_v50 = vadd.f32 %v800_v48, %v2935_v28  ;;  %v449_v51 = vpop.f32.mrb[17].mxu0  ;;  %v802_v52 = vpop.f32.mrb[17].mxu1 }
 0x14f   :  { %v450_v0 = vadd.f32 %v449_v51, %v2937_v29  ;;  %v803_v54 = vadd.f32 %v802_v52, %v2939_v30  ;;  %v451_v55 = vpop.f32.mrb[18].mxu0  ;;  %v804_v56 = vpop.f32.mrb[18].mxu1 }
 0x150   :  { %v1111_v57 = vmax.f32 %v448_v49, 0.0  ;;  %v452_v58 = vadd.f32 %v451_v55, %v2933_v27  ;;  %v805_v59 = vadd.f32 %v804_v56, %v2935_v28  ;;  %v453_v1 = vpop.f32.mrb[19].mxu0  ;;  %v806_v2 = vpop.f32.mrb[19].mxu1  ;;  %v1113_v10 = vmax.f32 %v801_v50, 0.0 }
 0x151   :  { %v1112_v3 = vmax.f32 %v450_v0, 0.0  ;;  %v454_v8 = vadd.f32 %v453_v1, %v2937_v29  ;;  %v807_v9 = vadd.f32 %v806_v2, %v2939_v30  ;;  %v1114_v13 = vmax.f32 %v803_v54, 0.0 }
 0x152   :  { %v1115_v11 = vmax.f32 %v452_v58, 0.0  ;;  %v1117_v12 = vmax.f32 %v805_v59, 0.0  ;;  %716 = vmatmul.mubr.bf16.gmra.mrb[124].mxu0 %v158_v53  ;;  %1069 = vmatmul.mubr.bf16.gmra.mrb[124].mxu1 %v158_v53 }
 0x153   :  { %v1116_v14 = vmax.f32 %v454_v8, 0.0  ;;  %v1118_v15 = vmax.f32 %v807_v9, 0.0  ;;  %1758 = vmatprep.mubr.bf16.mxu1 %v2957_v62  ;;  %2047 = vmatprep.mubr.bf16.mxu0 %v2959_v63 }
 0x154   :  { %v3025_v16 = vpack.c.bf16 %v1115_v11, %v1111_v57  ;;  %v3027_v17 = vpack.c.bf16 %v1117_v12, %v1113_v10 }
 0x155   :  { %v3029_v18 = vpack.c.bf16 %v1116_v14, %v1112_v3  ;;  %v3031_v19 = vpack.c.bf16 %v1118_v15, %v1114_v13  ;;  %v457_v20 = vpop.f32.mrb[20].mxu0  ;;  %v810_v21 = vpop.f32.mrb[20].mxu1 }
 0x156   :  { %v458_v22 = vadd.f32 %v457_v20, %v2933_v27  ;;  %v811_v23 = vadd.f32 %v810_v21, %v2935_v28  ;;  %v459_v24 = vpop.f32.mrb[21].mxu0  ;;  %v812_v25 = vpop.f32.mrb[21].mxu1 }
 0x157   :  { %v460_v62 = vadd.f32 %v459_v24, %v2937_v29  ;;  %v813_v63 = vadd.f32 %v812_v25, %v2939_v30  ;;  %v461_v26 = vpop.f32.mrb[22].mxu0  ;;  %v814_v31 = vpop.f32.mrb[22].mxu1 }
 0x158   :  { %v1119_v36 = vmax.f32 %v458_v22, 0.0  ;;  %v462_v37 = vadd.f32 %v461_v26, %v2933_v27  ;;  %v815_v38 = vadd.f32 %v814_v31, %v2935_v28  ;;  %v463_v39 = vpop.f32.mrb[23].mxu0  ;;  %v816_v40 = vpop.f32.mrb[23].mxu1  ;;  %v1121_v48 = vmax.f32 %v811_v23, 0.0 }
 0x159   :  { %v1120_v41 = vmax.f32 %v460_v62, 0.0  ;;  %v464_v42 = vadd.f32 %v463_v39, %v2937_v29  ;;  %v817_v47 = vadd.f32 %v816_v40, %v2939_v30  ;;  %v1122_v51 = vmax.f32 %v813_v63, 0.0 }
 0x15a   :  { %v1123_v49 = vmax.f32 %v462_v37, 0.0  ;;  %v1125_v50 = vmax.f32 %v815_v38, 0.0  ;;  %1759 = vmatmul.mubr.bf16.vlgmr.msra.gmra.mrb[128].mxu1 %v2953_v60  ;;  %2048 = vmatmul.mubr.bf16.vlgmr.msra.gmra.mrb[128].mxu0 %v2955_v61 }
 0x15b   :  { %v1124_v52 = vmax.f32 %v464_v42, 0.0  ;;  %v1126_v53 = vmax.f32 %v817_v47, 0.0  ;;  %1766 = vmatprep.mubr.bf16.mxu1 %v2975_v34  ;;  %2055 = vmatprep.mubr.bf16.mxu0 %v2977_v35 }
 0x15c   :  { %v3045_v0 = vpack.c.bf16 %v1123_v49, %v1119_v36  ;;  %v3047_v54 = vpack.c.bf16 %v1125_v50, %v1121_v48 }
 0x15d   :  { %v3049_v55 = vpack.c.bf16 %v1124_v52, %v1120_v41  ;;  %v3051_v56 = vpack.c.bf16 %v1126_v53, %v1122_v51  ;;  %v467_v57 = vpop.f32.mrb[24].mxu0  ;;  %v820_v58 = vpop.f32.mrb[24].mxu1 }
 0x15e   :  { %v468_v60 = vadd.f32 %v467_v57, %v2933_v27  ;;  %v821_v61 = vadd.f32 %v820_v58, %v2935_v28  ;;  %v469_v59 = vpop.f32.mrb[25].mxu0  ;;  %v822_v1 = vpop.f32.mrb[25].mxu1 }
 0x15f   :  { %v470_v34 = vadd.f32 %v469_v59, %v2937_v29  ;;  %v823_v35 = vadd.f32 %v822_v1, %v2939_v30  ;;  %v471_v2 = vpop.f32.mrb[26].mxu0  ;;  %v824_v3 = vpop.f32.mrb[26].mxu1 }
 0x160   :  { %v1127_v8 = vmax.f32 %v468_v60, 0.0  ;;  %v472_v9 = vadd.f32 %v471_v2, %v2933_v27  ;;  %v825_v10 = vadd.f32 %v824_v3, %v2935_v28  ;;  %v473_v11 = vpop.f32.mrb[27].mxu0  ;;  %v826_v12 = vpop.f32.mrb[27].mxu1  ;;  %v1129_v20 = vmax.f32 %v821_v61, 0.0 }
 0x161   :  { %v1128_v13 = vmax.f32 %v470_v34, 0.0  ;;  %v474_v14 = vadd.f32 %v473_v11, %v2937_v29  ;;  %v827_v15 = vadd.f32 %v826_v12, %v2939_v30  ;;  %v1130_v23 = vmax.f32 %v823_v35, 0.0 }
 0x162   :  { %v1131_v21 = vmax.f32 %v472_v9, 0.0  ;;  %v1133_v22 = vmax.f32 %v825_v10, 0.0  ;;  %1767 = vmatmul.mubr.bf16.gmra.mrb[132].mxu1 %v2971_v32  ;;  %2056 = vmatmul.mubr.bf16.gmra.mrb[132].mxu0 %v2973_v33 }
 0x163   :  { %v1132_v24 = vmax.f32 %v474_v14, 0.0  ;;  %v1134_v25 = vmax.f32 %v827_v15, 0.0  ;;  %1774 = vmatprep.mubr.bf16.mxu1 %v2993_v6  ;;  %2063 = vmatprep.mubr.bf16.mxu0 %v2995_v7 }
 0x164   :  { %v3065_v62 = vpack.c.bf16 %v1131_v21, %v1127_v8  ;;  %v3067_v63 = vpack.c.bf16 %v1133_v22, %v1129_v20 }
 0x165   :  { %v3069_v26 = vpack.c.bf16 %v1132_v24, %v1128_v13  ;;  %v3071_v31 = vpack.c.bf16 %v1134_v25, %v1130_v23  ;;  %v477_v36 = vpop.f32.mrb[28].mxu0  ;;  %v830_v37 = vpop.f32.mrb[28].mxu1 }
 0x166   :  { %v478_v32 = vadd.f32 %v477_v36, %v2933_v27  ;;  %v831_v33 = vadd.f32 %v830_v37, %v2935_v28  ;;  %v479_v38 = vpop.f32.mrb[29].mxu0  ;;  %v832_v39 = vpop.f32.mrb[29].mxu1 }
 0x167   :  { %v480_v6 = vadd.f32 %v479_v38, %v2937_v29  ;;  %v833_v7 = vadd.f32 %v832_v39, %v2939_v30  ;;  %v481_v40 = vpop.f32.mrb[30].mxu0  ;;  %v834_v41 = vpop.f32.mrb[30].mxu1 }
 0x168   :  { %v1135_v42 = vmax.f32 %v478_v32, 0.0  ;;  %v482_v47 = vadd.f32 %v481_v40, %v2933_v27  ;;  %v835_v48 = vadd.f32 %v834_v41, %v2935_v28  ;;  %v483_v49 = vpop.f32.mrb[31].mxu0  ;;  %v836_v50 = vpop.f32.mrb[31].mxu1  ;;  %v1137_v57 = vmax.f32 %v831_v33, 0.0 }
 0x169   :  { %v1136_v51 = vmax.f32 %v480_v6, 0.0  ;;  %v484_v52 = vadd.f32 %v483_v49, %v2937_v29  ;;  %v837_v53 = vadd.f32 %v836_v50, %v2939_v30  ;;  %v1138_v61 = vmax.f32 %v833_v7, 0.0 }
 0x16a   :  { %v1139_v58 = vmax.f32 %v482_v47, 0.0  ;;  %v1141_v60 = vmax.f32 %v835_v48, 0.0  ;;  %1775 = vmatmul.mubr.bf16.gmra.mrb[136].mxu1 %v2989_v4  ;;  %2064 = vmatmul.mubr.bf16.gmra.mrb[136].mxu0 %v2991_v5 }
 0x16b   :  { %v1140_v59 = vmax.f32 %v484_v52, 0.0  ;;  %v1142_v1 = vmax.f32 %v837_v53, 0.0  ;;  %1782 = vmatprep.mubr.bf16.mxu1 %v3011_v45  ;;  %2071 = vmatprep.mubr.bf16.mxu0 %v3013_v46 }
 0x16c   :  { %v3085_v34 = vpack.c.bf16 %v1139_v58, %v1135_v42  ;;  %v3087_v35 = vpack.c.bf16 %v1141_v60, %v1137_v57 }
 0x16d   :  { %v3089_v2 = vpack.c.bf16 %v1140_v59, %v1136_v51  ;;  %v3091_v3 = vpack.c.bf16 %v1142_v1, %v1138_v61  ;;  %v487_v8 = vpop.f32.mrb[32].mxu0  ;;  %v840_v9 = vpop.f32.mrb[32].mxu1 }
 0x16e   :  { %v488_v4 = vadd.f32 %v487_v8, %v2933_v27  ;;  %v841_v5 = vadd.f32 %v840_v9, %v2935_v28  ;;  %v489_v10 = vpop.f32.mrb[33].mxu0  ;;  %v842_v11 = vpop.f32.mrb[33].mxu1 }
 0x16f   :  { %v490_v45 = vadd.f32 %v489_v10, %v2937_v29  ;;  %v843_v46 = vadd.f32 %v842_v11, %v2939_v30  ;;  %v491_v12 = vpop.f32.mrb[34].mxu0  ;;  %v844_v13 = vpop.f32.mrb[34].mxu1 }
 0x170   :  { %v1143_v14 = vmax.f32 %v488_v4, 0.0  ;;  %v492_v15 = vadd.f32 %v491_v12, %v2933_v27  ;;  %v845_v20 = vadd.f32 %v844_v13, %v2935_v28  ;;  %v493_v21 = vpop.f32.mrb[35].mxu0  ;;  %v846_v22 = vpop.f32.mrb[35].mxu1  ;;  %v1145_v36 = vmax.f32 %v841_v5, 0.0 }
 0x171   :  { %v1144_v23 = vmax.f32 %v490_v45, 0.0  ;;  %v494_v24 = vadd.f32 %v493_v21, %v2937_v29  ;;  %v847_v25 = vadd.f32 %v846_v22, %v2939_v30  ;;  %v1146_v33 = vmax.f32 %v843_v46, 0.0 }
 0x172   :  { %v1147_v37 = vmax.f32 %v492_v15, 0.0  ;;  %v1149_v32 = vmax.f32 %v845_v20, 0.0  ;;  %1783 = vmatmul.mubr.bf16.gmra.mrb[140].mxu1 %v3007_v43  ;;  %2072 = vmatmul.mubr.bf16.gmra.mrb[140].mxu0 %v3009_v44 }
 0x173   :  { %v1148_v38 = vmax.f32 %v494_v24, 0.0  ;;  %v1150_v39 = vmax.f32 %v847_v25, 0.0  ;;  %1790 = vmatprep.mubr.bf16.mxu1 %v3029_v18  ;;  %2079 = vmatprep.mubr.bf16.mxu0 %v3031_v19 }
 0x174   :  { %v3105_v6 = vpack.c.bf16 %v1147_v37, %v1143_v14  ;;  %v3107_v7 = vpack.c.bf16 %v1149_v32, %v1145_v36 }
 0x175   :  { %v3109_v40 = vpack.c.bf16 %v1148_v38, %v1144_v23  ;;  %v3111_v41 = vpack.c.bf16 %v1150_v39, %v1146_v33  ;;  %v497_v42 = vpop.f32.mrb[36].mxu0  ;;  %v850_v47 = vpop.f32.mrb[36].mxu1 }
 0x176   :  { %v498_v43 = vadd.f32 %v497_v42, %v2933_v27  ;;  %v851_v44 = vadd.f32 %v850_v47, %v2935_v28  ;;  %v499_v48 = vpop.f32.mrb[37].mxu0  ;;  %v852_v49 = vpop.f32.mrb[37].mxu1 }
 0x177   :  { %v500_v18 = vadd.f32 %v499_v48, %v2937_v29  ;;  %v853_v19 = vadd.f32 %v852_v49, %v2939_v30  ;;  %v501_v50 = vpop.f32.mrb[38].mxu0  ;;  %v854_v51 = vpop.f32.mrb[38].mxu1 }
 0x178   :  { %v1151_v52 = vmax.f32 %v498_v43, 0.0  ;;  %v502_v53 = vadd.f32 %v501_v50, %v2933_v27  ;;  %v855_v57 = vadd.f32 %v854_v51, %v2935_v28  ;;  %v503_v58 = vpop.f32.mrb[39].mxu0  ;;  %v856_v60 = vpop.f32.mrb[39].mxu1  ;;  %v1153_v8 = vmax.f32 %v851_v44, 0.0 }
 0x179   :  { %v1152_v61 = vmax.f32 %v500_v18, 0.0  ;;  %v504_v59 = vadd.f32 %v503_v58, %v2937_v29  ;;  %v857_v1 = vadd.f32 %v856_v60, %v2939_v30  ;;  %v1154_v5 = vmax.f32 %v853_v19, 0.0 }
 0x17a   :  { %v1155_v9 = vmax.f32 %v502_v53, 0.0  ;;  %v1157_v4 = vmax.f32 %v855_v57, 0.0  ;;  %1791 = vmatmul.mubr.bf16.gmra.mrb[144].mxu1 %v3025_v16  ;;  %2080 = vmatmul.mubr.bf16.gmra.mrb[144].mxu0 %v3027_v17 }
 0x17b   :  { %v1156_v10 = vmax.f32 %v504_v59, 0.0  ;;  %v1158_v11 = vmax.f32 %v857_v1, 0.0  ;;  %1798 = vmatprep.mubr.bf16.mxu1 %v3049_v55  ;;  %2087 = vmatprep.mubr.bf16.mxu0 %v3051_v56 }
 0x17c   :  { %v3125_v45 = vpack.c.bf16 %v1155_v9, %v1151_v52  ;;  %v3127_v46 = vpack.c.bf16 %v1157_v4, %v1153_v8 }
 0x17d   :  { %v3129_v12 = vpack.c.bf16 %v1156_v10, %v1152_v61  ;;  %v3131_v13 = vpack.c.bf16 %v1158_v11, %v1154_v5  ;;  %v507_v14 = vpop.f32.mrb[40].mxu0  ;;  %v860_v15 = vpop.f32.mrb[40].mxu1 }
 0x17e   :  { %v508_v16 = vadd.f32 %v507_v14, %v2933_v27  ;;  %v861_v17 = vadd.f32 %v860_v15, %v2935_v28  ;;  %v509_v20 = vpop.f32.mrb[41].mxu0  ;;  %v862_v21 = vpop.f32.mrb[41].mxu1 }
 0x17f   :  { %v510_v55 = vadd.f32 %v509_v20, %v2937_v29  ;;  %v863_v56 = vadd.f32 %v862_v21, %v2939_v30  ;;  %v511_v22 = vpop.f32.mrb[42].mxu0  ;;  %v864_v23 = vpop.f32.mrb[42].mxu1 }
 0x180   :  { %v1159_v24 = vmax.f32 %v508_v16, 0.0  ;;  %v512_v25 = vadd.f32 %v511_v22, %v2933_v27  ;;  %v865_v36 = vadd.f32 %v864_v23, %v2935_v28  ;;  %v513_v37 = vpop.f32.mrb[43].mxu0  ;;  %v866_v32 = vpop.f32.mrb[43].mxu1  ;;  %v1161_v42 = vmax.f32 %v861_v17, 0.0 }
 0x181   :  { %v1160_v33 = vmax.f32 %v510_v55, 0.0  ;;  %v514_v38 = vadd.f32 %v513_v37, %v2937_v29  ;;  %v867_v39 = vadd.f32 %v866_v32, %v2939_v30  ;;  %v1162_v44 = vmax.f32 %v863_v56, 0.0 }
 0x182   :  { %v1163_v47 = vmax.f32 %v512_v25, 0.0  ;;  %v1165_v43 = vmax.f32 %v865_v36, 0.0  ;;  %1799 = vmatmul.mubr.bf16.gmra.mrb[148].mxu1 %v3045_v0  ;;  %2088 = vmatmul.mubr.bf16.gmra.mrb[148].mxu0 %v3047_v54 }
 0x183   :  { %v1164_v48 = vmax.f32 %v514_v38, 0.0  ;;  %v1166_v49 = vmax.f32 %v867_v39, 0.0  ;;  %1806 = vmatprep.mubr.bf16.mxu1 %v3069_v26  ;;  %2095 = vmatprep.mubr.bf16.mxu0 %v3071_v31 }
 0x184   :  { %v3145_v18 = vpack.c.bf16 %v1163_v47, %v1159_v24  ;;  %v3147_v19 = vpack.c.bf16 %v1165_v43, %v1161_v42 }
 0x185   :  { %v3149_v50 = vpack.c.bf16 %v1164_v48, %v1160_v33  ;;  %v3151_v51 = vpack.c.bf16 %v1166_v49, %v1162_v44  ;;  %v517_v52 = vpop.f32.mrb[44].mxu0  ;;  %v870_v53 = vpop.f32.mrb[44].mxu1 }
 0x186   :  { %v518_v0 = vadd.f32 %v517_v52, %v2933_v27  ;;  %v871_v54 = vadd.f32 %v870_v53, %v2935_v28  ;;  %v519_v57 = vpop.f32.mrb[45].mxu0  ;;  %v872_v58 = vpop.f32.mrb[45].mxu1 }
 0x187   :  { %v520_v26 = vadd.f32 %v519_v57, %v2937_v29  ;;  %v873_v31 = vadd.f32 %v872_v58, %v2939_v30  ;;  %v521_v60 = vpop.f32.mrb[46].mxu0  ;;  %v874_v61 = vpop.f32.mrb[46].mxu1 }
 0x188   :  { %v1167_v59 = vmax.f32 %v518_v0, 0.0  ;;  %v522_v1 = vadd.f32 %v521_v60, %v2933_v27  ;;  %v875_v8 = vadd.f32 %v874_v61, %v2935_v28  ;;  %v523_v9 = vpop.f32.mrb[47].mxu0  ;;  %v876_v4 = vpop.f32.mrb[47].mxu1  ;;  %v1169_v14 = vmax.f32 %v871_v54, 0.0 }
 0x189   :  { %v1168_v5 = vmax.f32 %v520_v26, 0.0  ;;  %v524_v10 = vadd.f32 %v523_v9, %v2937_v29  ;;  %v877_v11 = vadd.f32 %v876_v4, %v2939_v30  ;;  %v1170_v17 = vmax.f32 %v873_v31, 0.0 }
 0x18a   :  { %v1171_v15 = vmax.f32 %v522_v1, 0.0  ;;  %v1173_v16 = vmax.f32 %v875_v8, 0.0  ;;  %1807 = vmatmul.mubr.bf16.gmra.mrb[152].mxu1 %v3065_v62  ;;  %2096 = vmatmul.mubr.bf16.gmra.mrb[152].mxu0 %v3067_v63 }
 0x18b   :  { %v1172_v20 = vmax.f32 %v524_v10, 0.0  ;;  %v1174_v21 = vmax.f32 %v877_v11, 0.0  ;;  %1814 = vmatprep.mubr.bf16.mxu1 %v3089_v2  ;;  %2103 = vmatprep.mubr.bf16.mxu0 %v3091_v3 }
 0x18c   :  { %v3165_v55 = vpack.c.bf16 %v1171_v15, %v1167_v59  ;;  %v3167_v56 = vpack.c.bf16 %v1173_v16, %v1169_v14 }
 0x18d   :  { %v3169_v22 = vpack.c.bf16 %v1172_v20, %v1168_v5  ;;  %v3171_v23 = vpack.c.bf16 %v1174_v21, %v1170_v17  ;;  %v527_v24 = vpop.f32.mrb[48].mxu0  ;;  %v880_v25 = vpop.f32.mrb[48].mxu1 }
 0x18e   :  { %v528_v62 = vadd.f32 %v527_v24, %v2933_v27  ;;  %v881_v63 = vadd.f32 %v880_v25, %v2935_v28  ;;  %v529_v36 = vpop.f32.mrb[49].mxu0  ;;  %v882_v37 = vpop.f32.mrb[49].mxu1 }
 0x18f   :  { %v530_v2 = vadd.f32 %v529_v36, %v2937_v29  ;;  %v883_v3 = vadd.f32 %v882_v37, %v2939_v30  ;;  %v531_v32 = vpop.f32.mrb[50].mxu0  ;;  %v884_v33 = vpop.f32.mrb[50].mxu1 }
 0x190   :  { %v1175_v38 = vmax.f32 %v528_v62, 0.0  ;;  %v532_v39 = vadd.f32 %v531_v32, %v2933_v27  ;;  %v885_v42 = vadd.f32 %v884_v33, %v2935_v28  ;;  %v533_v47 = vpop.f32.mrb[51].mxu0  ;;  %v886_v43 = vpop.f32.mrb[51].mxu1  ;;  %v1177_v52 = vmax.f32 %v881_v63, 0.0 }
 0x191   :  { %v1176_v44 = vmax.f32 %v530_v2, 0.0  ;;  %v534_v48 = vadd.f32 %v533_v47, %v2937_v29  ;;  %v887_v49 = vadd.f32 %v886_v43, %v2939_v30  ;;  %v1178_v54 = vmax.f32 %v883_v3, 0.0 }
 0x192   :  { %v1179_v53 = vmax.f32 %v532_v39, 0.0  ;;  %v1181_v0 = vmax.f32 %v885_v42, 0.0  ;;  %1815 = vmatmul.mubr.bf16.gmra.mrb[156].mxu1 %v3085_v34  ;;  %2104 = vmatmul.mubr.bf16.gmra.mrb[156].mxu0 %v3087_v35 }
 0x193   :  { %v1180_v57 = vmax.f32 %v534_v48, 0.0  ;;  %v1182_v58 = vmax.f32 %v887_v49, 0.0  ;;  %1822 = vmatprep.mubr.bf16.mxu1 %v3109_v40  ;;  %2111 = vmatprep.mubr.bf16.mxu0 %v3111_v41 }
 0x194   :  { %v3185_v26 = vpack.c.bf16 %v1179_v53, %v1175_v38  ;;  %v3187_v31 = vpack.c.bf16 %v1181_v0, %v1177_v52 }
 0x195   :  { %v3189_v60 = vpack.c.bf16 %v1180_v57, %v1176_v44  ;;  %v3191_v61 = vpack.c.bf16 %v1182_v58, %v1178_v54  ;;  %v537_v59 = vpop.f32.mrb[52].mxu0  ;;  %v890_v1 = vpop.f32.mrb[52].mxu1 }
 0x196   :  { %v538_v34 = vadd.f32 %v537_v59, %v2933_v27  ;;  %v891_v35 = vadd.f32 %v890_v1, %v2935_v28  ;;  %v539_v8 = vpop.f32.mrb[53].mxu0  ;;  %v892_v9 = vpop.f32.mrb[53].mxu1 }
 0x197   :  { %v540_v40 = vadd.f32 %v539_v8, %v2937_v29  ;;  %v893_v41 = vadd.f32 %v892_v9, %v2939_v30  ;;  %v541_v4 = vpop.f32.mrb[54].mxu0  ;;  %v894_v5 = vpop.f32.mrb[54].mxu1 }
 0x198   :  { %v1183_v10 = vmax.f32 %v538_v34, 0.0  ;;  %v542_v11 = vadd.f32 %v541_v4, %v2933_v27  ;;  %v895_v14 = vadd.f32 %v894_v5, %v2935_v28  ;;  %v543_v15 = vpop.f32.mrb[55].mxu0  ;;  %v896_v16 = vpop.f32.mrb[55].mxu1  ;;  %v1185_v24 = vmax.f32 %v891_v35, 0.0 }
 0x199   :  { %v1184_v17 = vmax.f32 %v540_v40, 0.0  ;;  %v544_v20 = vadd.f32 %v543_v15, %v2937_v29  ;;  %v897_v21 = vadd.f32 %v896_v16, %v2939_v30  ;;  %v1186_v63 = vmax.f32 %v893_v41, 0.0 }
 0x19a   :  { %v1187_v25 = vmax.f32 %v542_v11, 0.0  ;;  %v1189_v62 = vmax.f32 %v895_v14, 0.0  ;;  %1823 = vmatmul.mubr.bf16.gmra.mrb[160].mxu1 %v3105_v6  ;;  %2112 = vmatmul.mubr.bf16.gmra.mrb[160].mxu0 %v3107_v7 }
 0x19b   :  { %v1188_v36 = vmax.f32 %v544_v20, 0.0  ;;  %v1190_v37 = vmax.f32 %v897_v21, 0.0  ;;  %1830 = vmatprep.mubr.bf16.mxu1 %v3129_v12  ;;  %2119 = vmatprep.mubr.bf16.mxu0 %v3131_v13 }
 0x19c   :  { %v3205_v2 = vpack.c.bf16 %v1187_v25, %v1183_v10  ;;  %v3207_v3 = vpack.c.bf16 %v1189_v62, %v1185_v24 }
 0x19d   :  { %v3209_v32 = vpack.c.bf16 %v1188_v36, %v1184_v17  ;;  %v3211_v33 = vpack.c.bf16 %v1190_v37, %v1186_v63  ;;  %v547_v38 = vpop.f32.mrb[56].mxu0  ;;  %v900_v39 = vpop.f32.mrb[56].mxu1 }
 0x19e   :  { %v548_v6 = vadd.f32 %v547_v38, %v2933_v27  ;;  %v901_v7 = vadd.f32 %v900_v39, %v2935_v28  ;;  %v549_v42 = vpop.f32.mrb[57].mxu0  ;;  %v902_v47 = vpop.f32.mrb[57].mxu1 }
 0x19f   :  { %v550_v12 = vadd.f32 %v549_v42, %v2937_v29  ;;  %v903_v13 = vadd.f32 %v902_v47, %v2939_v30  ;;  %v551_v43 = vpop.f32.mrb[58].mxu0  ;;  %v904_v44 = vpop.f32.mrb[58].mxu1 }
 0x1a0   :  { %v1191_v48 = vmax.f32 %v548_v6, 0.0  ;;  %v552_v49 = vadd.f32 %v551_v43, %v2933_v27  ;;  %v905_v52 = vadd.f32 %v904_v44, %v2935_v28  ;;  %v553_v53 = vpop.f32.mrb[59].mxu0  ;;  %v906_v0 = vpop.f32.mrb[59].mxu1  ;;  %v1193_v59 = vmax.f32 %v901_v7, 0.0 }
 0x1a1   :  { %v1192_v54 = vmax.f32 %v550_v12, 0.0  ;;  %v554_v57 = vadd.f32 %v553_v53, %v2937_v29  ;;  %v907_v58 = vadd.f32 %v906_v0, %v2939_v30  ;;  %v1194_v35 = vmax.f32 %v903_v13, 0.0 }
 0x1a2   :  { %v1195_v1 = vmax.f32 %v552_v49, 0.0  ;;  %v1197_v34 = vmax.f32 %v905_v52, 0.0  ;;  %1831 = vmatmul.mubr.bf16.gmra.mrb[164].mxu1 %v3125_v45  ;;  %2120 = vmatmul.mubr.bf16.gmra.mrb[164].mxu0 %v3127_v46 }
 0x1a3   :  { %v1196_v8 = vmax.f32 %v554_v57, 0.0  ;;  %v1198_v9 = vmax.f32 %v907_v58, 0.0  ;;  %1838 = vmatprep.mubr.bf16.mxu1 %v3149_v50  ;;  %2127 = vmatprep.mubr.bf16.mxu0 %v3151_v51 }
 0x1a4   :  { %v3225_v40 = vpack.c.bf16 %v1195_v1, %v1191_v48  ;;  %v3227_v41 = vpack.c.bf16 %v1197_v34, %v1193_v59 }
 0x1a5   :  { %v3229_v4 = vpack.c.bf16 %v1196_v8, %v1192_v54  ;;  %v3231_v5 = vpack.c.bf16 %v1198_v9, %v1194_v35  ;;  %v557_v10 = vpop.f32.mrb[60].mxu0  ;;  %v910_v11 = vpop.f32.mrb[60].mxu1 }
 0x1a6   :  { %v558_v45 = vadd.f32 %v557_v10, %v2933_v27  ;;  %v911_v46 = vadd.f32 %v910_v11, %v2935_v28  ;;  %v559_v14 = vpop.f32.mrb[61].mxu0  ;;  %v912_v15 = vpop.f32.mrb[61].mxu1 }
 0x1a7   :  { %v560_v50 = vadd.f32 %v559_v14, %v2937_v29  ;;  %v913_v51 = vadd.f32 %v912_v15, %v2939_v30  ;;  %v561_v16 = vpop.f32.mrb[62].mxu0  ;;  %v914_v17 = vpop.f32.mrb[62].mxu1 }
 0x1a8   :  { %v1199_v20 = vmax.f32 %v558_v45, 0.0  ;;  %v562_v21 = vadd.f32 %v561_v16, %v2933_v27  ;;  %v915_v24 = vadd.f32 %v914_v17, %v2935_v28  ;;  %v563_v25 = vpop.f32.mrb[63].mxu0  ;;  %v916_v62 = vpop.f32.mrb[63].mxu1  ;;  %v1201_v38 = vmax.f32 %v911_v46, 0.0 }
 0x1a9   :  { %v1200_v63 = vmax.f32 %v560_v50, 0.0  ;;  %v564_v36 = vadd.f32 %v563_v25, %v2937_v29  ;;  %v917_v37 = vadd.f32 %v916_v62, %v2939_v30  ;;  %v1202_v7 = vmax.f32 %v913_v51, 0.0 }
 0x1aa   :  { %v1203_v39 = vmax.f32 %v562_v21, 0.0  ;;  %v1205_v6 = vmax.f32 %v915_v24, 0.0  ;;  %1839 = vmatmul.mubr.bf16.gmra.mrb[168].mxu1 %v3145_v18  ;;  %2128 = vmatmul.mubr.bf16.gmra.mrb[168].mxu0 %v3147_v19 }
 0x1ab   :  { %v1204_v42 = vmax.f32 %v564_v36, 0.0  ;;  %v1206_v47 = vmax.f32 %v917_v37, 0.0  ;;  %1846 = vmatprep.mubr.bf16.mxu1 %v3169_v22  ;;  %2135 = vmatprep.mubr.bf16.mxu0 %v3171_v23 }
 0x1ac   :  { %v3245_v12 = vpack.c.bf16 %v1203_v39, %v1199_v20  ;;  %v3247_v13 = vpack.c.bf16 %v1205_v6, %v1201_v38 }
 0x1ad   :  { %v3249_v43 = vpack.c.bf16 %v1204_v42, %v1200_v63  ;;  %v3251_v44 = vpack.c.bf16 %v1206_v47, %v1202_v7  ;;  %v567_v48 = vpop.f32.mrb[64].mxu0  ;;  %v920_v49 = vpop.f32.mrb[64].mxu1 }
 0x1ae   :  { %v568_v18 = vadd.f32 %v567_v48, %v2933_v27  ;;  %v921_v19 = vadd.f32 %v920_v49, %v2935_v28  ;;  %v569_v52 = vpop.f32.mrb[65].mxu0  ;;  %v922_v53 = vpop.f32.mrb[65].mxu1 }
 0x1af   :  { %v570_v22 = vadd.f32 %v569_v52, %v2937_v29  ;;  %v923_v23 = vadd.f32 %v922_v53, %v2939_v30  ;;  %v571_v0 = vpop.f32.mrb[66].mxu0  ;;  %v924_v54 = vpop.f32.mrb[66].mxu1 }
 0x1b0   :  { %v1207_v57 = vmax.f32 %v568_v18, 0.0  ;;  %v572_v58 = vadd.f32 %v571_v0, %v2933_v27  ;;  %v925_v59 = vadd.f32 %v924_v54, %v2935_v28  ;;  %v573_v1 = vpop.f32.mrb[67].mxu0  ;;  %v926_v34 = vpop.f32.mrb[67].mxu1  ;;  %v1209_v10 = vmax.f32 %v921_v19, 0.0 }
 0x1b1   :  { %v1208_v35 = vmax.f32 %v570_v22, 0.0  ;;  %v574_v8 = vadd.f32 %v573_v1, %v2937_v29  ;;  %v927_v9 = vadd.f32 %v926_v34, %v2939_v30  ;;  %v1210_v46 = vmax.f32 %v923_v23, 0.0 }
 0x1b2   :  { %v1211_v11 = vmax.f32 %v572_v58, 0.0  ;;  %v1213_v45 = vmax.f32 %v925_v59, 0.0  ;;  %1847 = vmatmul.mubr.bf16.gmra.mrb[172].mxu1 %v3165_v55  ;;  %2136 = vmatmul.mubr.bf16.gmra.mrb[172].mxu0 %v3167_v56 }
 0x1b3   :  { %v1212_v14 = vmax.f32 %v574_v8, 0.0  ;;  %v1214_v15 = vmax.f32 %v927_v9, 0.0  ;;  %1854 = vmatprep.mubr.bf16.mxu1 %v3189_v60  ;;  %2143 = vmatprep.mubr.bf16.mxu0 %v3191_v61 }
 0x1b4   :  { %v3265_v50 = vpack.c.bf16 %v1211_v11, %v1207_v57  ;;  %v3267_v51 = vpack.c.bf16 %v1213_v45, %v1209_v10 }
 0x1b5   :  { %v3269_v16 = vpack.c.bf16 %v1212_v14, %v1208_v35  ;;  %v3271_v17 = vpack.c.bf16 %v1214_v15, %v1210_v46  ;;  %v577_v20 = vpop.f32.mrb[68].mxu0  ;;  %v930_v21 = vpop.f32.mrb[68].mxu1 }
 0x1b6   :  { %v578_v55 = vadd.f32 %v577_v20, %v2933_v27  ;;  %v931_v56 = vadd.f32 %v930_v21, %v2935_v28  ;;  %v579_v24 = vpop.f32.mrb[69].mxu0  ;;  %v932_v25 = vpop.f32.mrb[69].mxu1 }
 0x1b7   :  { %v580_v60 = vadd.f32 %v579_v24, %v2937_v29  ;;  %v933_v61 = vadd.f32 %v932_v25, %v2939_v30  ;;  %v581_v62 = vpop.f32.mrb[70].mxu0  ;;  %v934_v63 = vpop.f32.mrb[70].mxu1 }
 0x1b8   :  { %v1215_v36 = vmax.f32 %v578_v55, 0.0  ;;  %v582_v37 = vadd.f32 %v581_v62, %v2933_v27  ;;  %v935_v38 = vadd.f32 %v934_v63, %v2935_v28  ;;  %v583_v39 = vpop.f32.mrb[71].mxu0  ;;  %v936_v6 = vpop.f32.mrb[71].mxu1  ;;  %v1217_v48 = vmax.f32 %v931_v56, 0.0 }
 0x1b9   :  { %v1216_v7 = vmax.f32 %v580_v60, 0.0  ;;  %v584_v42 = vadd.f32 %v583_v39, %v2937_v29  ;;  %v937_v47 = vadd.f32 %v936_v6, %v2939_v30  ;;  %v1218_v19 = vmax.f32 %v933_v61, 0.0 }
 0x1ba   :  { %v1219_v49 = vmax.f32 %v582_v37, 0.0  ;;  %v1221_v18 = vmax.f32 %v935_v38, 0.0  ;;  %1855 = vmatmul.mubr.bf16.gmra.mrb[176].mxu1 %v3185_v26  ;;  %2144 = vmatmul.mubr.bf16.gmra.mrb[176].mxu0 %v3187_v31 }
 0x1bb   :  { %v1220_v52 = vmax.f32 %v584_v42, 0.0  ;;  %v1222_v53 = vmax.f32 %v937_v47, 0.0  ;;  %1862 = vmatprep.mubr.bf16.mxu1 %v3209_v32  ;;  %2151 = vmatprep.mubr.bf16.mxu0 %v3211_v33 }
 0x1bc   :  { %v3285_v22 = vpack.c.bf16 %v1219_v49, %v1215_v36  ;;  %v3287_v23 = vpack.c.bf16 %v1221_v18, %v1217_v48 }
 0x1bd   :  { %v3289_v0 = vpack.c.bf16 %v1220_v52, %v1216_v7  ;;  %v3291_v54 = vpack.c.bf16 %v1222_v53, %v1218_v19  ;;  %v587_v57 = vpop.f32.mrb[72].mxu0  ;;  %v940_v58 = vpop.f32.mrb[72].mxu1 }
 0x1be   :  { %v588_v26 = vadd.f32 %v587_v57, %v2933_v27  ;;  %v941_v31 = vadd.f32 %v940_v58, %v2935_v28  ;;  %v589_v59 = vpop.f32.mrb[73].mxu0  ;;  %v942_v1 = vpop.f32.mrb[73].mxu1 }
 0x1bf   :  { %v590_v32 = vadd.f32 %v589_v59, %v2937_v29  ;;  %v943_v33 = vadd.f32 %v942_v1, %v2939_v30  ;;  %v591_v34 = vpop.f32.mrb[74].mxu0  ;;  %v944_v35 = vpop.f32.mrb[74].mxu1 }
 0x1c0   :  { %v1223_v8 = vmax.f32 %v588_v26, 0.0  ;;  %v592_v9 = vadd.f32 %v591_v34, %v2933_v27  ;;  %v945_v10 = vadd.f32 %v944_v35, %v2935_v28  ;;  %v593_v11 = vpop.f32.mrb[75].mxu0  ;;  %v946_v45 = vpop.f32.mrb[75].mxu1  ;;  %v1225_v20 = vmax.f32 %v941_v31, 0.0 }
 0x1c1   :  { %v1224_v46 = vmax.f32 %v590_v32, 0.0  ;;  %v594_v14 = vadd.f32 %v593_v11, %v2937_v29  ;;  %v947_v15 = vadd.f32 %v946_v45, %v2939_v30  ;;  %v1226_v56 = vmax.f32 %v943_v33, 0.0 }
 0x1c2   :  { %v1227_v21 = vmax.f32 %v592_v9, 0.0  ;;  %v1229_v55 = vmax.f32 %v945_v10, 0.0  ;;  %1863 = vmatmul.mubr.bf16.gmra.mrb[180].mxu1 %v3205_v2  ;;  %2152 = vmatmul.mubr.bf16.gmra.mrb[180].mxu0 %v3207_v3 }
 0x1c3   :  { %v1228_v24 = vmax.f32 %v594_v14, 0.0  ;;  %v1230_v25 = vmax.f32 %v947_v15, 0.0  ;;  %1870 = vmatprep.mubr.bf16.mxu1 %v3229_v4  ;;  %2159 = vmatprep.mubr.bf16.mxu0 %v3231_v5 }
 0x1c4   :  { %v3305_v60 = vpack.c.bf16 %v1227_v21, %v1223_v8  ;;  %v3307_v61 = vpack.c.bf16 %v1229_v55, %v1225_v20 }
 0x1c5   :  { %v3309_v62 = vpack.c.bf16 %v1228_v24, %v1224_v46  ;;  %v3311_v63 = vpack.c.bf16 %v1230_v25, %v1226_v56  ;;  %v597_v36 = vpop.f32.mrb[76].mxu0  ;;  %v950_v37 = vpop.f32.mrb[76].mxu1 }
 0x1c6   :  { %v598_v2 = vadd.f32 %v597_v36, %v2933_v27  ;;  %v951_v3 = vadd.f32 %v950_v37, %v2935_v28  ;;  %v599_v38 = vpop.f32.mrb[77].mxu0  ;;  %v952_v39 = vpop.f32.mrb[77].mxu1 }
 0x1c7   :  { %v600_v4 = vadd.f32 %v599_v38, %v2937_v29  ;;  %v953_v5 = vadd.f32 %v952_v39, %v2939_v30  ;;  %v601_v6 = vpop.f32.mrb[78].mxu0  ;;  %v954_v7 = vpop.f32.mrb[78].mxu1 }
 0x1c8   :  { %v1231_v42 = vmax.f32 %v598_v2, 0.0  ;;  %v602_v47 = vadd.f32 %v601_v6, %v2933_v27  ;;  %v955_v48 = vadd.f32 %v954_v7, %v2935_v28  ;;  %v603_v49 = vpop.f32.mrb[79].mxu0  ;;  %v956_v18 = vpop.f32.mrb[79].mxu1  ;;  %v1233_v57 = vmax.f32 %v951_v3, 0.0 }
 0x1c9   :  { %v1232_v19 = vmax.f32 %v600_v4, 0.0  ;;  %v604_v52 = vadd.f32 %v603_v49, %v2937_v29  ;;  %v957_v53 = vadd.f32 %v956_v18, %v2939_v30  ;;  %v1234_v31 = vmax.f32 %v953_v5, 0.0 }
 0x1ca   :  { %v1235_v58 = vmax.f32 %v602_v47, 0.0  ;;  %v1237_v26 = vmax.f32 %v955_v48, 0.0  ;;  %1871 = vmatmul.mubr.bf16.gmra.mrb[184].mxu1 %v3225_v40  ;;  %2160 = vmatmul.mubr.bf16.gmra.mrb[184].mxu0 %v3227_v41 }
 0x1cb   :  { %v1236_v59 = vmax.f32 %v604_v52, 0.0  ;;  %v1238_v1 = vmax.f32 %v957_v53, 0.0  ;;  %1878 = vmatprep.mubr.bf16.mxu1 %v3249_v43  ;;  %2167 = vmatprep.mubr.bf16.mxu0 %v3251_v44 }
 0x1cc   :  { %v3325_v32 = vpack.c.bf16 %v1235_v58, %v1231_v42  ;;  %v3327_v33 = vpack.c.bf16 %v1237_v26, %v1233_v57 }
 0x1cd   :  { %v3329_v34 = vpack.c.bf16 %v1236_v59, %v1232_v19  ;;  %v3331_v35 = vpack.c.bf16 %v1238_v1, %v1234_v31  ;;  %v607_v8 = vpop.f32.mrb[80].mxu0  ;;  %v960_v9 = vpop.f32.mrb[80].mxu1 }
 0x1ce   :  { %v608_v40 = vadd.f32 %v607_v8, %v2933_v27  ;;  %v961_v41 = vadd.f32 %v960_v9, %v2935_v28  ;;  %v609_v10 = vpop.f32.mrb[81].mxu0  ;;  %v962_v11 = vpop.f32.mrb[81].mxu1 }
 0x1cf   :  { %v610_v43 = vadd.f32 %v609_v10, %v2937_v29  ;;  %v963_v44 = vadd.f32 %v962_v11, %v2939_v30  ;;  %v611_v45 = vpop.f32.mrb[82].mxu0  ;;  %v964_v46 = vpop.f32.mrb[82].mxu1 }
 0x1d0   :  { %v1239_v14 = vmax.f32 %v608_v40, 0.0  ;;  %v612_v15 = vadd.f32 %v611_v45, %v2933_v27  ;;  %v965_v20 = vadd.f32 %v964_v46, %v2935_v28  ;;  %v613_v21 = vpop.f32.mrb[83].mxu0  ;;  %v966_v55 = vpop.f32.mrb[83].mxu1  ;;  %v1241_v36 = vmax.f32 %v961_v41, 0.0 }
 0x1d1   :  { %v1240_v56 = vmax.f32 %v610_v43, 0.0  ;;  %v614_v24 = vadd.f32 %v613_v21, %v2937_v29  ;;  %v967_v25 = vadd.f32 %v966_v55, %v2939_v30  ;;  %v1242_v3 = vmax.f32 %v963_v44, 0.0 }
 0x1d2   :  { %v1243_v37 = vmax.f32 %v612_v15, 0.0  ;;  %v1245_v2 = vmax.f32 %v965_v20, 0.0  ;;  %1879 = vmatmul.mubr.bf16.gmra.mrb[188].mxu1 %v3245_v12  ;;  %2168 = vmatmul.mubr.bf16.gmra.mrb[188].mxu0 %v3247_v13 }
 0x1d3   :  { %v1244_v38 = vmax.f32 %v614_v24, 0.0  ;;  %v1246_v39 = vmax.f32 %v967_v25, 0.0  ;;  %1886 = vmatprep.mubr.bf16.mxu1 %v3269_v16  ;;  %2175 = vmatprep.mubr.bf16.mxu0 %v3271_v17 }
 0x1d4   :  { %v3345_v4 = vpack.c.bf16 %v1243_v37, %v1239_v14  ;;  %v3347_v5 = vpack.c.bf16 %v1245_v2, %v1241_v36 }
 0x1d5   :  { %v3349_v6 = vpack.c.bf16 %v1244_v38, %v1240_v56  ;;  %v3351_v7 = vpack.c.bf16 %v1246_v39, %v1242_v3  ;;  %v617_v42 = vpop.f32.mrb[84].mxu0  ;;  %v970_v47 = vpop.f32.mrb[84].mxu1 }
 0x1d6   :  { %v618_v12 = vadd.f32 %v617_v42, %v2933_v27  ;;  %v971_v13 = vadd.f32 %v970_v47, %v2935_v28  ;;  %v619_v48 = vpop.f32.mrb[85].mxu0  ;;  %v972_v49 = vpop.f32.mrb[85].mxu1 }
 0x1d7   :  { %v620_v16 = vadd.f32 %v619_v48, %v2937_v29  ;;  %v973_v17 = vadd.f32 %v972_v49, %v2939_v30  ;;  %v621_v18 = vpop.f32.mrb[86].mxu0  ;;  %v974_v19 = vpop.f32.mrb[86].mxu1 }
 0x1d8   :  { %v1247_v52 = vmax.f32 %v618_v12, 0.0  ;;  %v622_v53 = vadd.f32 %v621_v18, %v2933_v27  ;;  %v975_v57 = vadd.f32 %v974_v19, %v2935_v28  ;;  %v623_v58 = vpop.f32.mrb[87].mxu0  ;;  %v976_v26 = vpop.f32.mrb[87].mxu1  ;;  %v1249_v8 = vmax.f32 %v971_v13, 0.0 }
 0x1d9   :  { %v1248_v31 = vmax.f32 %v620_v16, 0.0  ;;  %v624_v59 = vadd.f32 %v623_v58, %v2937_v29  ;;  %v977_v1 = vadd.f32 %v976_v26, %v2939_v30  ;;  %v1250_v41 = vmax.f32 %v973_v17, 0.0 }
 0x1da   :  { %v1251_v9 = vmax.f32 %v622_v53, 0.0  ;;  %v1253_v40 = vmax.f32 %v975_v57, 0.0  ;;  %1887 = vmatmul.mubr.bf16.gmra.mrb[192].mxu1 %v3265_v50  ;;  %2176 = vmatmul.mubr.bf16.gmra.mrb[192].mxu0 %v3267_v51 }
 0x1db   :  { %v1252_v10 = vmax.f32 %v624_v59, 0.0  ;;  %v1254_v11 = vmax.f32 %v977_v1, 0.0  ;;  %1894 = vmatprep.mubr.bf16.mxu1 %v3289_v0  ;;  %2183 = vmatprep.mubr.bf16.mxu0 %v3291_v54 }
 0x1dc   :  { %v3365_v43 = vpack.c.bf16 %v1251_v9, %v1247_v52  ;;  %v3367_v44 = vpack.c.bf16 %v1253_v40, %v1249_v8 }
 0x1dd   :  { %v3369_v45 = vpack.c.bf16 %v1252_v10, %v1248_v31  ;;  %v3371_v46 = vpack.c.bf16 %v1254_v11, %v1250_v41  ;;  %v627_v14 = vpop.f32.mrb[88].mxu0  ;;  %v980_v15 = vpop.f32.mrb[88].mxu1 }
 0x1de   :  { %v628_v50 = vadd.f32 %v627_v14, %v2933_v27  ;;  %v981_v51 = vadd.f32 %v980_v15, %v2935_v28  ;;  %v629_v20 = vpop.f32.mrb[89].mxu0  ;;  %v982_v21 = vpop.f32.mrb[89].mxu1 }
 0x1df   :  { %v630_v0 = vadd.f32 %v629_v20, %v2937_v29  ;;  %v983_v54 = vadd.f32 %v982_v21, %v2939_v30  ;;  %v631_v55 = vpop.f32.mrb[90].mxu0  ;;  %v984_v56 = vpop.f32.mrb[90].mxu1 }
 0x1e0   :  { %v1255_v24 = vmax.f32 %v628_v50, 0.0  ;;  %v632_v25 = vadd.f32 %v631_v55, %v2933_v27  ;;  %v985_v36 = vadd.f32 %v984_v56, %v2935_v28  ;;  %v633_v37 = vpop.f32.mrb[91].mxu0  ;;  %v986_v2 = vpop.f32.mrb[91].mxu1  ;;  %v1257_v42 = vmax.f32 %v981_v51, 0.0 }
 0x1e1   :  { %v1256_v3 = vmax.f32 %v630_v0, 0.0  ;;  %v634_v38 = vadd.f32 %v633_v37, %v2937_v29  ;;  %v987_v39 = vadd.f32 %v986_v2, %v2939_v30  ;;  %v1258_v13 = vmax.f32 %v983_v54, 0.0 }
 0x1e2   :  { %v1259_v47 = vmax.f32 %v632_v25, 0.0  ;;  %v1261_v12 = vmax.f32 %v985_v36, 0.0  ;;  %1895 = vmatmul.mubr.bf16.gmra.mrb[196].mxu1 %v3285_v22  ;;  %2184 = vmatmul.mubr.bf16.gmra.mrb[196].mxu0 %v3287_v23 }
 0x1e3   :  { %v1260_v48 = vmax.f32 %v634_v38, 0.0  ;;  %v1262_v49 = vmax.f32 %v987_v39, 0.0  ;;  %1902 = vmatprep.mubr.bf16.mxu1 %v3309_v62  ;;  %2191 = vmatprep.mubr.bf16.mxu0 %v3311_v63 }
 0x1e4   :  { %v3385_v16 = vpack.c.bf16 %v1259_v47, %v1255_v24  ;;  %v3387_v17 = vpack.c.bf16 %v1261_v12, %v1257_v42 }
 0x1e5   :  { %v3389_v18 = vpack.c.bf16 %v1260_v48, %v1256_v3  ;;  %v3391_v19 = vpack.c.bf16 %v1262_v49, %v1258_v13  ;;  %v637_v52 = vpop.f32.mrb[92].mxu0  ;;  %v990_v53 = vpop.f32.mrb[92].mxu1 }
 0x1e6   :  { %v638_v22 = vadd.f32 %v637_v52, %v2933_v27  ;;  %v991_v23 = vadd.f32 %v990_v53, %v2935_v28  ;;  %v639_v57 = vpop.f32.mrb[93].mxu0  ;;  %v992_v58 = vpop.f32.mrb[93].mxu1 }
 0x1e7   :  { %v640_v62 = vadd.f32 %v639_v57, %v2937_v29  ;;  %v993_v63 = vadd.f32 %v992_v58, %v2939_v30  ;;  %v641_v26 = vpop.f32.mrb[94].mxu0  ;;  %v994_v31 = vpop.f32.mrb[94].mxu1 }
 0x1e8   :  { %v1263_v59 = vmax.f32 %v638_v22, 0.0  ;;  %v642_v1 = vadd.f32 %v641_v26, %v2933_v27  ;;  %v995_v8 = vadd.f32 %v994_v31, %v2935_v28  ;;  %v643_v9 = vpop.f32.mrb[95].mxu0  ;;  %v996_v40 = vpop.f32.mrb[95].mxu1  ;;  %v1265_v14 = vmax.f32 %v991_v23, 0.0 }
 0x1e9   :  { %v1264_v41 = vmax.f32 %v640_v62, 0.0  ;;  %v644_v10 = vadd.f32 %v643_v9, %v2937_v29  ;;  %v997_v11 = vadd.f32 %v996_v40, %v2939_v30  ;;  %v1266_v51 = vmax.f32 %v993_v63, 0.0 }
 0x1ea   :  { %v1267_v15 = vmax.f32 %v642_v1, 0.0  ;;  %v1269_v50 = vmax.f32 %v995_v8, 0.0  ;;  %1903 = vmatmul.mubr.bf16.gmra.mrb[200].mxu1 %v3305_v60  ;;  %2192 = vmatmul.mubr.bf16.gmra.mrb[200].mxu0 %v3307_v61 }
 0x1eb   :  { %v1268_v20 = vmax.f32 %v644_v10, 0.0  ;;  %v1270_v21 = vmax.f32 %v997_v11, 0.0  ;;  %1910 = vmatprep.mubr.bf16.mxu1 %v3329_v34  ;;  %2199 = vmatprep.mubr.bf16.mxu0 %v3331_v35 }
 0x1ec   :  { %v3405_v0 = vpack.c.bf16 %v1267_v15, %v1263_v59  ;;  %v3407_v54 = vpack.c.bf16 %v1269_v50, %v1265_v14 }
 0x1ed   :  { %v3409_v55 = vpack.c.bf16 %v1268_v20, %v1264_v41  ;;  %v3411_v56 = vpack.c.bf16 %v1270_v21, %v1266_v51  ;;  %v647_v24 = vpop.f32.mrb[96].mxu0  ;;  %v1000_v25 = vpop.f32.mrb[96].mxu1 }
 0x1ee   :  { %v648_v60 = vadd.f32 %v647_v24, %v2933_v27  ;;  %v1001_v61 = vadd.f32 %v1000_v25, %v2935_v28  ;;  %v649_v36 = vpop.f32.mrb[97].mxu0  ;;  %v1002_v37 = vpop.f32.mrb[97].mxu1 }
 0x1ef   :  { %v650_v34 = vadd.f32 %v649_v36, %v2937_v29  ;;  %v1003_v35 = vadd.f32 %v1002_v37, %v2939_v30  ;;  %v651_v2 = vpop.f32.mrb[98].mxu0  ;;  %v1004_v3 = vpop.f32.mrb[98].mxu1 }
 0x1f0   :  { %v1271_v38 = vmax.f32 %v648_v60, 0.0  ;;  %v652_v39 = vadd.f32 %v651_v2, %v2933_v27  ;;  %v1005_v42 = vadd.f32 %v1004_v3, %v2935_v28  ;;  %v653_v47 = vpop.f32.mrb[99].mxu0  ;;  %v1006_v12 = vpop.f32.mrb[99].mxu1  ;;  %v1273_v52 = vmax.f32 %v1001_v61, 0.0 }
 0x1f1   :  { %v1272_v13 = vmax.f32 %v650_v34, 0.0  ;;  %v654_v48 = vadd.f32 %v653_v47, %v2937_v29  ;;  %v1007_v49 = vadd.f32 %v1006_v12, %v2939_v30  ;;  %v1274_v23 = vmax.f32 %v1003_v35, 0.0 }
 0x1f2   :  { %v1275_v53 = vmax.f32 %v652_v39, 0.0  ;;  %v1277_v22 = vmax.f32 %v1005_v42, 0.0  ;;  %1911 = vmatmul.mubr.bf16.gmra.mrb[204].mxu1 %v3325_v32  ;;  %2200 = vmatmul.mubr.bf16.gmra.mrb[204].mxu0 %v3327_v33 }
 0x1f3   :  { %v1276_v57 = vmax.f32 %v654_v48, 0.0  ;;  %v1278_v58 = vmax.f32 %v1007_v49, 0.0  ;;  %1918 = vmatprep.mubr.bf16.mxu1 %v3349_v6  ;;  %2207 = vmatprep.mubr.bf16.mxu0 %v3351_v7 }
 0x1f4   :  { %v3425_v62 = vpack.c.bf16 %v1275_v53, %v1271_v38  ;;  %v3427_v63 = vpack.c.bf16 %v1277_v22, %v1273_v52 }
 0x1f5   :  { %v3429_v26 = vpack.c.bf16 %v1276_v57, %v1272_v13  ;;  %v3431_v31 = vpack.c.bf16 %v1278_v58, %v1274_v23  ;;  %v657_v59 = vpop.f32.mrb[100].mxu0  ;;  %v1010_v1 = vpop.f32.mrb[100].mxu1 }
 0x1f6   :  { %v658_v32 = vadd.f32 %v657_v59, %v2933_v27  ;;  %v1011_v33 = vadd.f32 %v1010_v1, %v2935_v28  ;;  %v659_v8 = vpop.f32.mrb[101].mxu0  ;;  %v1012_v9 = vpop.f32.mrb[101].mxu1 }
 0x1f7   :  { %v660_v6 = vadd.f32 %v659_v8, %v2937_v29  ;;  %v1013_v7 = vadd.f32 %v1012_v9, %v2939_v30  ;;  %v661_v40 = vpop.f32.mrb[102].mxu0  ;;  %v1014_v41 = vpop.f32.mrb[102].mxu1 }
 0x1f8   :  { %v1279_v10 = vmax.f32 %v658_v32, 0.0  ;;  %v662_v11 = vadd.f32 %v661_v40, %v2933_v27  ;;  %v1015_v14 = vadd.f32 %v1014_v41, %v2935_v28  ;;  %v663_v15 = vpop.f32.mrb[103].mxu0  ;;  %v1016_v50 = vpop.f32.mrb[103].mxu1  ;;  %v1281_v24 = vmax.f32 %v1011_v33, 0.0 }
 0x1f9   :  { %v1280_v51 = vmax.f32 %v660_v6, 0.0  ;;  %v664_v20 = vadd.f32 %v663_v15, %v2937_v29  ;;  %v1017_v21 = vadd.f32 %v1016_v50, %v2939_v30  ;;  %v1282_v61 = vmax.f32 %v1013_v7, 0.0 }
 0x1fa   :  { %v1283_v25 = vmax.f32 %v662_v11, 0.0  ;;  %v1285_v60 = vmax.f32 %v1015_v14, 0.0  ;;  %1919 = vmatmul.mubr.bf16.gmra.mrb[208].mxu1 %v3345_v4  ;;  %2208 = vmatmul.mubr.bf16.gmra.mrb[208].mxu0 %v3347_v5 }
 0x1fb   :  { %v1284_v36 = vmax.f32 %v664_v20, 0.0  ;;  %v1286_v37 = vmax.f32 %v1017_v21, 0.0  ;;  %1926 = vmatprep.mubr.bf16.mxu1 %v3369_v45  ;;  %2215 = vmatprep.mubr.bf16.mxu0 %v3371_v46 }
 0x1fc   :  { %v3445_v34 = vpack.c.bf16 %v1283_v25, %v1279_v10  ;;  %v3447_v35 = vpack.c.bf16 %v1285_v60, %v1281_v24 }
 0x1fd   :  { %v3449_v2 = vpack.c.bf16 %v1284_v36, %v1280_v51  ;;  %v3451_v3 = vpack.c.bf16 %v1286_v37, %v1282_v61  ;;  %v667_v38 = vpop.f32.mrb[104].mxu0  ;;  %v1020_v39 = vpop.f32.mrb[104].mxu1 }
 0x1fe   :  { %v668_v4 = vadd.f32 %v667_v38, %v2933_v27  ;;  %v1021_v5 = vadd.f32 %v1020_v39, %v2935_v28  ;;  %v669_v42 = vpop.f32.mrb[105].mxu0  ;;  %v1022_v47 = vpop.f32.mrb[105].mxu1 }
 0x1ff   :  { %v670_v45 = vadd.f32 %v669_v42, %v2937_v29  ;;  %v1023_v46 = vadd.f32 %v1022_v47, %v2939_v30  ;;  %v671_v12 = vpop.f32.mrb[106].mxu0  ;;  %v1024_v13 = vpop.f32.mrb[106].mxu1 }
 0x200   :  { %v1287_v48 = vmax.f32 %v668_v4, 0.0  ;;  %v672_v49 = vadd.f32 %v671_v12, %v2933_v27  ;;  %v1025_v52 = vadd.f32 %v1024_v13, %v2935_v28  ;;  %v673_v53 = vpop.f32.mrb[107].mxu0  ;;  %v1026_v22 = vpop.f32.mrb[107].mxu1  ;;  %v1289_v59 = vmax.f32 %v1021_v5, 0.0 }
 0x201   :  { %v1288_v23 = vmax.f32 %v670_v45, 0.0  ;;  %v674_v57 = vadd.f32 %v673_v53, %v2937_v29  ;;  %v1027_v58 = vadd.f32 %v1026_v22, %v2939_v30  ;;  %v1290_v33 = vmax.f32 %v1023_v46, 0.0 }
 0x202   :  { %v1291_v1 = vmax.f32 %v672_v49, 0.0  ;;  %v1293_v32 = vmax.f32 %v1025_v52, 0.0  ;;  %1927 = vmatmul.mubr.bf16.gmra.mrb[212].mxu1 %v3365_v43  ;;  %2216 = vmatmul.mubr.bf16.gmra.mrb[212].mxu0 %v3367_v44 }
 0x203   :  { %v1292_v8 = vmax.f32 %v674_v57, 0.0  ;;  %v1294_v9 = vmax.f32 %v1027_v58, 0.0  ;;  %1934 = vmatprep.mubr.bf16.mxu1 %v3389_v18  ;;  %2223 = vmatprep.mubr.bf16.mxu0 %v3391_v19 }
 0x204   :  { %v3465_v6 = vpack.c.bf16 %v1291_v1, %v1287_v48  ;;  %v3467_v7 = vpack.c.bf16 %v1293_v32, %v1289_v59 }
 0x205   :  { %v3469_v40 = vpack.c.bf16 %v1292_v8, %v1288_v23  ;;  %v3471_v41 = vpack.c.bf16 %v1294_v9, %v1290_v33  ;;  %v677_v10 = vpop.f32.mrb[108].mxu0  ;;  %v1030_v11 = vpop.f32.mrb[108].mxu1 }
 0x206   :  { %v678_v43 = vadd.f32 %v677_v10, %v2933_v27  ;;  %v1031_v44 = vadd.f32 %v1030_v11, %v2935_v28  ;;  %v679_v14 = vpop.f32.mrb[109].mxu0  ;;  %v1032_v15 = vpop.f32.mrb[109].mxu1 }
 0x207   :  { %v680_v18 = vadd.f32 %v679_v14, %v2937_v29  ;;  %v1033_v19 = vadd.f32 %v1032_v15, %v2939_v30  ;;  %v681_v50 = vpop.f32.mrb[110].mxu0  ;;  %v1034_v51 = vpop.f32.mrb[110].mxu1 }
 0x208   :  { %v1295_v20 = vmax.f32 %v678_v43, 0.0  ;;  %v682_v21 = vadd.f32 %v681_v50, %v2933_v27  ;;  %v1035_v24 = vadd.f32 %v1034_v51, %v2935_v28  ;;  %v683_v25 = vpop.f32.mrb[111].mxu0  ;;  %v1036_v60 = vpop.f32.mrb[111].mxu1  ;;  %v1297_v38 = vmax.f32 %v1031_v44, 0.0 }
 0x209   :  { %v1296_v61 = vmax.f32 %v680_v18, 0.0  ;;  %v684_v36 = vadd.f32 %v683_v25, %v2937_v29  ;;  %v1037_v37 = vadd.f32 %v1036_v60, %v2939_v30  ;;  %v1298_v5 = vmax.f32 %v1033_v19, 0.0 }
 0x20a   :  { %v1299_v39 = vmax.f32 %v682_v21, 0.0  ;;  %v1301_v4 = vmax.f32 %v1035_v24, 0.0  ;;  %1935 = vmatmul.mubr.bf16.gmra.mrb[216].mxu1 %v3385_v16  ;;  %2224 = vmatmul.mubr.bf16.gmra.mrb[216].mxu0 %v3387_v17 }
 0x20b   :  { %v1300_v42 = vmax.f32 %v684_v36, 0.0  ;;  %v1302_v47 = vmax.f32 %v1037_v37, 0.0  ;;  %1942 = vmatprep.mubr.bf16.mxu1 %v3409_v55  ;;  %2231 = vmatprep.mubr.bf16.mxu0 %v3411_v56 }
 0x20c   :  { %v3485_v45 = vpack.c.bf16 %v1299_v39, %v1295_v20  ;;  %v3487_v46 = vpack.c.bf16 %v1301_v4, %v1297_v38 }
 0x20d   :  { %v3489_v12 = vpack.c.bf16 %v1300_v42, %v1296_v61  ;;  %v3491_v13 = vpack.c.bf16 %v1302_v47, %v1298_v5  ;;  %v687_v48 = vpop.f32.mrb[112].mxu0  ;;  %v1040_v49 = vpop.f32.mrb[112].mxu1 }
 0x20e   :  { %v688_v16 = vadd.f32 %v687_v48, %v2933_v27  ;;  %v1041_v17 = vadd.f32 %v1040_v49, %v2935_v28  ;;  %v689_v52 = vpop.f32.mrb[113].mxu0  ;;  %v1042_v53 = vpop.f32.mrb[113].mxu1 }
 0x20f   :  { %v690_v55 = vadd.f32 %v689_v52, %v2937_v29  ;;  %v1043_v56 = vadd.f32 %v1042_v53, %v2939_v30  ;;  %v691_v22 = vpop.f32.mrb[114].mxu0  ;;  %v1044_v23 = vpop.f32.mrb[114].mxu1 }
 0x210   :  { %v1303_v57 = vmax.f32 %v688_v16, 0.0  ;;  %v692_v58 = vadd.f32 %v691_v22, %v2933_v27  ;;  %v1045_v59 = vadd.f32 %v1044_v23, %v2935_v28  ;;  %v693_v1 = vpop.f32.mrb[115].mxu0  ;;  %v1046_v32 = vpop.f32.mrb[115].mxu1  ;;  %v1305_v10 = vmax.f32 %v1041_v17, 0.0 }
 0x211   :  { %v1304_v33 = vmax.f32 %v690_v55, 0.0  ;;  %v694_v8 = vadd.f32 %v693_v1, %v2937_v29  ;;  %v1047_v9 = vadd.f32 %v1046_v32, %v2939_v30  ;;  %v1306_v44 = vmax.f32 %v1043_v56, 0.0 }
 0x212   :  { %v1307_v11 = vmax.f32 %v692_v58, 0.0  ;;  %v1309_v43 = vmax.f32 %v1045_v59, 0.0  ;;  %1943 = vmatmul.mubr.bf16.gmra.mrb[220].mxu1 %v3405_v0  ;;  %2232 = vmatmul.mubr.bf16.gmra.mrb[220].mxu0 %v3407_v54 }
 0x213   :  { %v1308_v14 = vmax.f32 %v694_v8, 0.0  ;;  %v1310_v15 = vmax.f32 %v1047_v9, 0.0  ;;  %1950 = vmatprep.mubr.bf16.mxu1 %v3429_v26  ;;  %2239 = vmatprep.mubr.bf16.mxu0 %v3431_v31 }
 0x214   :  { %v3505_v18 = vpack.c.bf16 %v1307_v11, %v1303_v57  ;;  %v3507_v19 = vpack.c.bf16 %v1309_v43, %v1305_v10 }
 0x215   :  { %v3509_v50 = vpack.c.bf16 %v1308_v14, %v1304_v33  ;;  %v3511_v51 = vpack.c.bf16 %v1310_v15, %v1306_v44  ;;  %v697_v20 = vpop.f32.mrb[116].mxu0  ;;  %v1050_v21 = vpop.f32.mrb[116].mxu1 }
 0x216   :  { %v698_v0 = vadd.f32 %v697_v20, %v2933_v27  ;;  %v1051_v54 = vadd.f32 %v1050_v21, %v2935_v28  ;;  %v699_v24 = vpop.f32.mrb[117].mxu0  ;;  %v1052_v25 = vpop.f32.mrb[117].mxu1 }
 0x217   :  { %v700_v26 = vadd.f32 %v699_v24, %v2937_v29  ;;  %v1053_v31 = vadd.f32 %v1052_v25, %v2939_v30  ;;  %v701_v60 = vpop.f32.mrb[118].mxu0  ;;  %v1054_v61 = vpop.f32.mrb[118].mxu1 }
 0x218   :  { %v1311_v36 = vmax.f32 %v698_v0, 0.0  ;;  %v702_v37 = vadd.f32 %v701_v60, %v2933_v27  ;;  %v1055_v38 = vadd.f32 %v1054_v61, %v2935_v28  ;;  %v703_v39 = vpop.f32.mrb[119].mxu0  ;;  %v1056_v4 = vpop.f32.mrb[119].mxu1  ;;  %v1313_v48 = vmax.f32 %v1051_v54, 0.0 }
 0x219   :  { %v1312_v5 = vmax.f32 %v700_v26, 0.0  ;;  %v704_v42 = vadd.f32 %v703_v39, %v2937_v29  ;;  %v1057_v47 = vadd.f32 %v1056_v4, %v2939_v30  ;;  %v1314_v17 = vmax.f32 %v1053_v31, 0.0 }
 0x21a   :  { %v1315_v49 = vmax.f32 %v702_v37, 0.0  ;;  %v1317_v16 = vmax.f32 %v1055_v38, 0.0  ;;  %1951 = vmatmul.mubr.bf16.gmra.mrb[224].mxu1 %v3425_v62  ;;  %2240 = vmatmul.mubr.bf16.gmra.mrb[224].mxu0 %v3427_v63 }
 0x21b   :  { %v1316_v52 = vmax.f32 %v704_v42, 0.0  ;;  %v1318_v53 = vmax.f32 %v1057_v47, 0.0  ;;  %1958 = vmatprep.mubr.bf16.mxu1 %v3449_v2  ;;  %2247 = vmatprep.mubr.bf16.mxu0 %v3451_v3 }
 0x21c   :  { %v3525_v55 = vpack.c.bf16 %v1315_v49, %v1311_v36  ;;  %v3527_v56 = vpack.c.bf16 %v1317_v16, %v1313_v48 }
 0x21d   :  { %v3529_v22 = vpack.c.bf16 %v1316_v52, %v1312_v5  ;;  %v3531_v23 = vpack.c.bf16 %v1318_v53, %v1314_v17  ;;  %v707_v57 = vpop.f32.mrb[120].mxu0  ;;  %v1060_v58 = vpop.f32.mrb[120].mxu1 }
 0x21e   :  { %v708_v62 = vadd.f32 %v707_v57, %v2933_v27  ;;  %v1061_v63 = vadd.f32 %v1060_v58, %v2935_v28  ;;  %v709_v59 = vpop.f32.mrb[121].mxu0  ;;  %v1062_v1 = vpop.f32.mrb[121].mxu1 }
 0x21f   :  { %v710_v2 = vadd.f32 %v709_v59, %v2937_v29  ;;  %v1063_v3 = vadd.f32 %v1062_v1, %v2939_v30  ;;  %v711_v32 = vpop.f32.mrb[122].mxu0  ;;  %v1064_v33 = vpop.f32.mrb[122].mxu1 }
 0x220   :  { %v1319_v8 = vmax.f32 %v708_v62, 0.0  ;;  %v712_v9 = vadd.f32 %v711_v32, %v2933_v27  ;;  %v1065_v10 = vadd.f32 %v1064_v33, %v2935_v28  ;;  %v713_v11 = vpop.f32.mrb[123].mxu0  ;;  %v1066_v43 = vpop.f32.mrb[123].mxu1  ;;  %v1321_v20 = vmax.f32 %v1061_v63, 0.0 }
 0x221   :  { %v1320_v44 = vmax.f32 %v710_v2, 0.0  ;;  %v714_v14 = vadd.f32 %v713_v11, %v2937_v29  ;;  %v1067_v15 = vadd.f32 %v1066_v43, %v2939_v30  ;;  %v1322_v54 = vmax.f32 %v1063_v3, 0.0 }
 0x222   :  { %v1323_v21 = vmax.f32 %v712_v9, 0.0  ;;  %v1325_v0 = vmax.f32 %v1065_v10, 0.0  ;;  %1959 = vmatmul.mubr.bf16.gmra.mrb[228].mxu1 %v3445_v34  ;;  %2248 = vmatmul.mubr.bf16.gmra.mrb[228].mxu0 %v3447_v35 }
 0x223   :  { %v1324_v24 = vmax.f32 %v714_v14, 0.0  ;;  %v1326_v25 = vmax.f32 %v1067_v15, 0.0  ;;  %1966 = vmatprep.mubr.bf16.mxu1 %v3469_v40  ;;  %2255 = vmatprep.mubr.bf16.mxu0 %v3471_v41 }
 0x224   :  { %v3545_v26 = vpack.c.bf16 %v1323_v21, %v1319_v8  ;;  %v3547_v31 = vpack.c.bf16 %v1325_v0, %v1321_v20 }
 0x225   :  { %v3549_v60 = vpack.c.bf16 %v1324_v24, %v1320_v44  ;;  %v3551_v61 = vpack.c.bf16 %v1326_v25, %v1322_v54  ;;  %v717_v36 = vpop.f32.mrb[124].mxu0  ;;  %v1070_v37 = vpop.f32.mrb[124].mxu1 }
 0x226   :  { %v718_v34 = vadd.f32 %v717_v36, %v2933_v27  ;;  %v1071_v35 = vadd.f32 %v1070_v37, %v2935_v28  ;;  %v719_v38 = vpop.f32.mrb[125].mxu0  ;;  %v1072_v39 = vpop.f32.mrb[125].mxu1 }
 0x227   :  { %v720_v40 = vadd.f32 %v719_v38, %v2937_v29  ;;  %v1073_v41 = vadd.f32 %v1072_v39, %v2939_v30  ;;  %v721_v4 = vpop.f32.mrb[126].mxu0  ;;  %v1074_v5 = vpop.f32.mrb[126].mxu1 }
 0x228   :  { %v1327_v42 = vmax.f32 %v718_v34, 0.0  ;;  %v722_v47 = vadd.f32 %v721_v4, %v2933_v27  ;;  %v1075_v48 = vadd.f32 %v1074_v5, %v2935_v28  ;;  %v723_v49 = vpop.f32.mrb[127].mxu0  ;;  %v1076_v16 = vpop.f32.mrb[127].mxu1  ;;  %v1329_v57 = vmax.f32 %v1071_v35, 0.0  ;;  %v3568_v27 = vld [vmem:[%s3679_s4] ss:$0 sm:$0xff] }
 0x229   :  { %v1328_v17 = vmax.f32 %v720_v40, 0.0  ;;  %v724_v52 = vadd.f32 %v723_v49, %v2937_v29  ;;  %v1077_v53 = vadd.f32 %v1076_v16, %v2939_v30  ;;  %v1330_v63 = vmax.f32 %v1073_v41, 0.0  ;;  %s2774_s4 = smov [#allocation8]  }
 0x22a   :  { %v1331_v58 = vmax.f32 %v722_v47, 0.0  ;;  %v1333_v62 = vmax.f32 %v1075_v48, 0.0  ;;  %1967 = vmatmul.mubr.bf16.gmra.mrb[232].mxu1 %v3465_v6  ;;  %2256 = vmatmul.mubr.bf16.gmra.mrb[232].mxu0 %v3467_v7  ;;  %s2373_s10 = sshll.u32 %s2774_s4, 4  ;;  %s2374_s10 = int_to_ptr.vmem [resolvable:$true] %s2373_s10 }
 0x22b   :  { %v1332_v59 = vmax.f32 %v724_v52, 0.0  ;;  %v1334_v1 = vmax.f32 %v1077_v53, 0.0  ;;  %1974 = vmatprep.mubr.bf16.mxu1 %v3489_v12  ;;  %2263 = vmatprep.mubr.bf16.mxu0 %v3491_v13  ;;  %s2736_s11 = scalar_lea.vmem %s2374_s10, 8192  ;;  %p2741_p11 = scmp.lt.s32.totalorder %s2374_s10, %s2374_s10 }
 0x22c   :  { %v3570_v28 = vpack.c.bf16 %v1331_v58, %v1327_v42  ;;  %v3572_v29 = vpack.c.bf16 %v1333_v62, %v1329_v57  ;;  %p2737_p10 = scmp.ne.s32.totalorder %s2374_s10, %s2736_s11  ;;  %p2742_p12 = scmp.lt.s32.totalorder %s2736_s11, %s2736_s11 }
 0x22d   :  { %v3574_v30 = vpack.c.bf16 %v1332_v59, %v1328_v17  ;;  %v3576_v6 = vpack.c.bf16 %v1334_v1, %v1330_v63  ;;  %v1760_v7 = vpop.f32.mrb[128].mxu1  ;;  %v2049_v2 = vpop.f32.mrb[128].mxu0 }
 0x22e   :  { %v1761_v3 = vadd.f32 %v3568_v27, %v1760_v7  ;;  %v1762_v12 = vpop.f32.mrb[129].mxu1  ;;  %v2051_v32 = vpop.f32.mrb[129].mxu0  ;;  %p2743_p13 = por %p2742_p12, %p2741_p11 }
 0x22f   :  { %v1763_v13 = vpop.f32.mrb[130].mxu1  ;;  %v2052_v33 = vpop.f32.mrb[130].mxu0 }
 0x230   :  { %v2050_v8 = vadd.f32 %v2049_v2, %v1761_v3  ;;  %v1764_v9 = vadd.f32 %v3568_v27, %v1763_v13  ;;  %v1765_v10 = vpop.f32.mrb[131].mxu1  ;;  %v2054_v11 = vpop.f32.mrb[131].mxu0  ;;  %p2744_p0 = pnand %p2743_p13, %p2737_p10 }
 0x232   :  { %2304 = vst [vmem:[#allocation8] sm:$0xff] %v2050_v8  ;;  %v2053_v43 = vadd.f32 %v2052_v33, %v1764_v9  ;;  %1975 = vmatmul.mubr.bf16.gmra.mrb[236].mxu1 %v3485_v45  ;;  %2264 = vmatmul.mubr.bf16.gmra.mrb[236].mxu0 %v3487_v46 }
 0x233   :  { %1982 = vmatprep.mubr.bf16.mxu1 %v3509_v50  ;;  %2271 = vmatprep.mubr.bf16.mxu0 %v3511_v51 }
 0x234   :  { %2305 = vst [vmem:[#allocation8 + $0x8] sm:$0xff] %v2053_v43 }
 0x235   :  { %v1768_v44 = vpop.f32.mrb[132].mxu1  ;;  %v2057_v14 = vpop.f32.mrb[132].mxu0 }
 0x236   :  { %v1769_v15 = vadd.f32 %v3568_v27, %v1768_v44  ;;  %v1770_v20 = vpop.f32.mrb[133].mxu1  ;;  %v2059_v21 = vpop.f32.mrb[133].mxu0 }
 0x237   :  { %v1771_v0 = vpop.f32.mrb[134].mxu1  ;;  %v2060_v54 = vpop.f32.mrb[134].mxu0 }
 0x238   :  { %v2058_v24 = vadd.f32 %v2057_v14, %v1769_v15  ;;  %v1772_v25 = vadd.f32 %v3568_v27, %v1771_v0  ;;  %v1773_v36 = vpop.f32.mrb[135].mxu1  ;;  %v2062_v45 = vpop.f32.mrb[135].mxu0 }
 0x23a   :  { %2306 = vst [vmem:[#allocation8 + $0x10] sm:$0xff] %v2058_v24  ;;  %v2061_v46 = vadd.f32 %v2060_v54, %v1772_v25  ;;  %1983 = vmatmul.mubr.bf16.gmra.mrb[240].mxu1 %v3505_v18  ;;  %2272 = vmatmul.mubr.bf16.gmra.mrb[240].mxu0 %v3507_v19 }
 0x23b   :  { %1990 = vmatprep.mubr.bf16.mxu1 %v3529_v22  ;;  %2279 = vmatprep.mubr.bf16.mxu0 %v3531_v23 }
 0x23c   :  { %2307 = vst [vmem:[#allocation8 + $0x18] sm:$0xff] %v2061_v46 }
 0x23d   :  { %v1776_v50 = vpop.f32.mrb[136].mxu1  ;;  %v2065_v51 = vpop.f32.mrb[136].mxu0 }
 0x23e   :  { %v1777_v37 = vadd.f32 %v3568_v27, %v1776_v50  ;;  %v1778_v34 = vpop.f32.mrb[137].mxu1  ;;  %v2067_v35 = vpop.f32.mrb[137].mxu0 }
 0x23f   :  { %v1779_v38 = vpop.f32.mrb[138].mxu1  ;;  %v2068_v39 = vpop.f32.mrb[138].mxu0 }
 0x240   :  { %v2066_v40 = vadd.f32 %v2065_v51, %v1777_v37  ;;  %v1780_v41 = vadd.f32 %v3568_v27, %v1779_v38  ;;  %v1781_v4 = vpop.f32.mrb[139].mxu1  ;;  %v2070_v18 = vpop.f32.mrb[139].mxu0 }
 0x242   :  { %2308 = vst [vmem:[#allocation8 + $0x20] sm:$0xff] %v2066_v40  ;;  %v2069_v19 = vadd.f32 %v2068_v39, %v1780_v41  ;;  %1991 = vmatmul.mubr.bf16.gmra.mrb[244].mxu1 %v3525_v55  ;;  %2280 = vmatmul.mubr.bf16.gmra.mrb[244].mxu0 %v3527_v56 }
 0x243   :  { %1998 = vmatprep.mubr.bf16.mxu1 %v3549_v60  ;;  %2287 = vmatprep.mubr.bf16.mxu0 %v3551_v61 }
 0x244   :  { %2309 = vst [vmem:[#allocation8 + $0x28] sm:$0xff] %v2069_v19 }
 0x245   :  { %v1784_v22 = vpop.f32.mrb[140].mxu1  ;;  %v2073_v23 = vpop.f32.mrb[140].mxu0 }
 0x246   :  { %v1785_v5 = vadd.f32 %v3568_v27, %v1784_v22  ;;  %v1786_v42 = vpop.f32.mrb[141].mxu1  ;;  %v2075_v47 = vpop.f32.mrb[141].mxu0 }
 0x247   :  { %v1787_v48 = vpop.f32.mrb[142].mxu1  ;;  %v2076_v49 = vpop.f32.mrb[142].mxu0 }
 0x248   :  { %v2074_v16 = vadd.f32 %v2073_v23, %v1785_v5  ;;  %v1788_v17 = vadd.f32 %v3568_v27, %v1787_v48  ;;  %v1789_v52 = vpop.f32.mrb[143].mxu1  ;;  %v2078_v55 = vpop.f32.mrb[143].mxu0 }
 0x24a   :  { %2310 = vst [vmem:[#allocation8 + $0x30] sm:$0xff] %v2074_v16  ;;  %v2077_v56 = vadd.f32 %v2076_v49, %v1788_v17  ;;  %1999 = vmatmul.mubr.bf16.gmra.mrb[248].mxu1 %v3545_v26  ;;  %2288 = vmatmul.mubr.bf16.gmra.mrb[248].mxu0 %v3547_v31 }
 0x24b   :  { %2006 = vmatprep.mubr.bf16.mxu1 %v3574_v30  ;;  %2295 = vmatprep.mubr.bf16.mxu0 %v3576_v6 }
 0x24c   :  { %2311 = vst [vmem:[#allocation8 + $0x38] sm:$0xff] %v2077_v56 }
 0x24d   :  { %v1792_v60 = vpop.f32.mrb[144].mxu1  ;;  %v2081_v61 = vpop.f32.mrb[144].mxu0 }
 0x24e   :  { %v1793_v53 = vadd.f32 %v3568_v27, %v1792_v60  ;;  %v1794_v57 = vpop.f32.mrb[145].mxu1  ;;  %v2083_v58 = vpop.f32.mrb[145].mxu0 }
 0x24f   :  { %v1795_v62 = vpop.f32.mrb[146].mxu1  ;;  %v2084_v63 = vpop.f32.mrb[146].mxu0 }
 0x250   :  { %v2082_v59 = vadd.f32 %v2081_v61, %v1793_v53  ;;  %v1796_v1 = vadd.f32 %v3568_v27, %v1795_v62  ;;  %v1797_v7 = vpop.f32.mrb[147].mxu1  ;;  %v2086_v26 = vpop.f32.mrb[147].mxu0 }
 0x252   :  { %2312 = vst [vmem:[#allocation8 + $0x40] sm:$0xff] %v2082_v59  ;;  %v2085_v31 = vadd.f32 %v2084_v63, %v1796_v1  ;;  %2007 = vmatmul.mubr.bf16.gmra.mrb[252].mxu1 %v3570_v28  ;;  %2296 = vmatmul.mubr.bf16.gmra.mrb[252].mxu0 %v3572_v29 }
 0x254   :  { %2313 = vst [vmem:[#allocation8 + $0x48] sm:$0xff] %v2085_v31 }
 0x255   :  { %v1800_v30 = vpop.f32.mrb[148].mxu1  ;;  %v2089_v6 = vpop.f32.mrb[148].mxu0 }
 0x256   :  { %v1801_v2 = vadd.f32 %v3568_v27, %v1800_v30  ;;  %v1802_v3 = vpop.f32.mrb[149].mxu1  ;;  %v2091_v12 = vpop.f32.mrb[149].mxu0 }
 0x257   :  { %v1803_v32 = vpop.f32.mrb[150].mxu1  ;;  %v2092_v13 = vpop.f32.mrb[150].mxu0 }
 0x258   :  { %v2090_v33 = vadd.f32 %v2089_v6, %v1801_v2  ;;  %v1804_v8 = vadd.f32 %v3568_v27, %v1803_v32  ;;  %v1805_v9 = vpop.f32.mrb[151].mxu1  ;;  %v2094_v10 = vpop.f32.mrb[151].mxu0 }
 0x25a   :  { %2314 = vst [vmem:[#allocation8 + $0x50] sm:$0xff] %v2090_v33  ;;  %v2093_v11 = vadd.f32 %v2092_v13, %v1804_v8 }
 0x25c   :  { %2315 = vst [vmem:[#allocation8 + $0x58] sm:$0xff] %v2093_v11 }
 0x25d   :  { %v1808_v28 = vpop.f32.mrb[152].mxu1  ;;  %v2097_v43 = vpop.f32.mrb[152].mxu0 }
 0x25e   :  { %v1809_v29 = vadd.f32 %v3568_v27, %v1808_v28  ;;  %v1810_v44 = vpop.f32.mrb[153].mxu1  ;;  %v2099_v14 = vpop.f32.mrb[153].mxu0 }
 0x25f   :  { %v1811_v15 = vpop.f32.mrb[154].mxu1  ;;  %v2100_v20 = vpop.f32.mrb[154].mxu0 }
 0x260   :  { %v2098_v21 = vadd.f32 %v2097_v43, %v1809_v29  ;;  %v1812_v0 = vadd.f32 %v3568_v27, %v1811_v15  ;;  %v1813_v54 = vpop.f32.mrb[155].mxu1  ;;  %v2102_v24 = vpop.f32.mrb[155].mxu0 }
 0x262   :  { %2316 = vst [vmem:[#allocation8 + $0x60] sm:$0xff] %v2098_v21  ;;  %v2101_v25 = vadd.f32 %v2100_v20, %v1812_v0 }
 0x264   :  { %2317 = vst [vmem:[#allocation8 + $0x68] sm:$0xff] %v2101_v25 }
 0x265   :  { %v1816_v36 = vpop.f32.mrb[156].mxu1  ;;  %v2105_v45 = vpop.f32.mrb[156].mxu0 }
 0x266   :  { %v1817_v46 = vadd.f32 %v3568_v27, %v1816_v36  ;;  %v1818_v50 = vpop.f32.mrb[157].mxu1  ;;  %v2107_v51 = vpop.f32.mrb[157].mxu0 }
 0x267   :  { %v1819_v37 = vpop.f32.mrb[158].mxu1  ;;  %v2108_v34 = vpop.f32.mrb[158].mxu0 }
 0x268   :  { %v2106_v35 = vadd.f32 %v2105_v45, %v1817_v46  ;;  %v1820_v38 = vadd.f32 %v3568_v27, %v1819_v37  ;;  %v1821_v39 = vpop.f32.mrb[159].mxu1  ;;  %v2110_v40 = vpop.f32.mrb[159].mxu0 }
 0x26a   :  { %2318 = vst [vmem:[#allocation8 + $0x70] sm:$0xff] %v2106_v35  ;;  %v2109_v41 = vadd.f32 %v2108_v34, %v1820_v38 }
 0x26c   :  { %2319 = vst [vmem:[#allocation8 + $0x78] sm:$0xff] %v2109_v41 }
 0x26d   :  { %v1824_v4 = vpop.f32.mrb[160].mxu1  ;;  %v2113_v18 = vpop.f32.mrb[160].mxu0 }
 0x26e   :  { %v1825_v19 = vadd.f32 %v3568_v27, %v1824_v4  ;;  %v1826_v22 = vpop.f32.mrb[161].mxu1  ;;  %v2115_v23 = vpop.f32.mrb[161].mxu0 }
 0x26f   :  { %v1827_v5 = vpop.f32.mrb[162].mxu1  ;;  %v2116_v42 = vpop.f32.mrb[162].mxu0 }
 0x270   :  { %v2114_v47 = vadd.f32 %v2113_v18, %v1825_v19  ;;  %v1828_v48 = vadd.f32 %v3568_v27, %v1827_v5  ;;  %v1829_v49 = vpop.f32.mrb[163].mxu1  ;;  %v2118_v16 = vpop.f32.mrb[163].mxu0 }
 0x272   :  { %2320 = vst [vmem:[#allocation8 + $0x80] sm:$0xff] %v2114_v47  ;;  %v2117_v17 = vadd.f32 %v2116_v42, %v1828_v48 }
 0x274   :  { %2321 = vst [vmem:[#allocation8 + $0x88] sm:$0xff] %v2117_v17 }
 0x275   :  { %v1832_v52 = vpop.f32.mrb[164].mxu1  ;;  %v2121_v55 = vpop.f32.mrb[164].mxu0 }
 0x276   :  { %v1833_v56 = vadd.f32 %v3568_v27, %v1832_v52  ;;  %v1834_v60 = vpop.f32.mrb[165].mxu1  ;;  %v2123_v61 = vpop.f32.mrb[165].mxu0 }
 0x277   :  { %v1835_v53 = vpop.f32.mrb[166].mxu1  ;;  %v2124_v57 = vpop.f32.mrb[166].mxu0 }
 0x278   :  { %v2122_v58 = vadd.f32 %v2121_v55, %v1833_v56  ;;  %v1836_v62 = vadd.f32 %v3568_v27, %v1835_v53  ;;  %v1837_v63 = vpop.f32.mrb[167].mxu1  ;;  %v2126_v59 = vpop.f32.mrb[167].mxu0 }
 0x27a   :  { %2322 = vst [vmem:[#allocation8 + $0x90] sm:$0xff] %v2122_v58  ;;  %v2125_v1 = vadd.f32 %v2124_v57, %v1836_v62 }
 0x27c   :  { %2323 = vst [vmem:[#allocation8 + $0x98] sm:$0xff] %v2125_v1 }
 0x27d   :  { %v1840_v7 = vpop.f32.mrb[168].mxu1  ;;  %v2129_v26 = vpop.f32.mrb[168].mxu0 }
 0x27e   :  { %v1841_v31 = vadd.f32 %v3568_v27, %v1840_v7  ;;  %v1842_v30 = vpop.f32.mrb[169].mxu1  ;;  %v2131_v6 = vpop.f32.mrb[169].mxu0 }
 0x27f   :  { %v1843_v2 = vpop.f32.mrb[170].mxu1  ;;  %v2132_v3 = vpop.f32.mrb[170].mxu0 }
 0x280   :  { %v2130_v12 = vadd.f32 %v2129_v26, %v1841_v31  ;;  %v1844_v32 = vadd.f32 %v3568_v27, %v1843_v2  ;;  %v1845_v13 = vpop.f32.mrb[171].mxu1  ;;  %v2134_v33 = vpop.f32.mrb[171].mxu0 }
 0x282   :  { %2324 = vst [vmem:[#allocation8 + $0xa0] sm:$0xff] %v2130_v12  ;;  %v2133_v8 = vadd.f32 %v2132_v3, %v1844_v32 }
 0x284   :  { %2325 = vst [vmem:[#allocation8 + $0xa8] sm:$0xff] %v2133_v8 }
 0x285   :  { %v1848_v9 = vpop.f32.mrb[172].mxu1  ;;  %v2137_v10 = vpop.f32.mrb[172].mxu0 }
 0x286   :  { %v1849_v11 = vadd.f32 %v3568_v27, %v1848_v9  ;;  %v1850_v28 = vpop.f32.mrb[173].mxu1  ;;  %v2139_v43 = vpop.f32.mrb[173].mxu0 }
 0x287   :  { %v1851_v29 = vpop.f32.mrb[174].mxu1  ;;  %v2140_v44 = vpop.f32.mrb[174].mxu0 }
 0x288   :  { %v2138_v14 = vadd.f32 %v2137_v10, %v1849_v11  ;;  %v1852_v15 = vadd.f32 %v3568_v27, %v1851_v29  ;;  %v1853_v20 = vpop.f32.mrb[175].mxu1  ;;  %v2142_v21 = vpop.f32.mrb[175].mxu0 }
 0x28a   :  { %2326 = vst [vmem:[#allocation8 + $0xb0] sm:$0xff] %v2138_v14  ;;  %v2141_v0 = vadd.f32 %v2140_v44, %v1852_v15 }
 0x28c   :  { %2327 = vst [vmem:[#allocation8 + $0xb8] sm:$0xff] %v2141_v0 }
 0x28d   :  { %v1856_v54 = vpop.f32.mrb[176].mxu1  ;;  %v2145_v24 = vpop.f32.mrb[176].mxu0 }
 0x28e   :  { %v1857_v25 = vadd.f32 %v3568_v27, %v1856_v54  ;;  %v1858_v36 = vpop.f32.mrb[177].mxu1  ;;  %v2147_v45 = vpop.f32.mrb[177].mxu0 }
 0x28f   :  { %v1859_v46 = vpop.f32.mrb[178].mxu1  ;;  %v2148_v50 = vpop.f32.mrb[178].mxu0 }
 0x290   :  { %v2146_v51 = vadd.f32 %v2145_v24, %v1857_v25  ;;  %v1860_v37 = vadd.f32 %v3568_v27, %v1859_v46  ;;  %v1861_v34 = vpop.f32.mrb[179].mxu1  ;;  %v2150_v35 = vpop.f32.mrb[179].mxu0 }
 0x292   :  { %2328 = vst [vmem:[#allocation8 + $0xc0] sm:$0xff] %v2146_v51  ;;  %v2149_v38 = vadd.f32 %v2148_v50, %v1860_v37 }
 0x294   :  { %2329 = vst [vmem:[#allocation8 + $0xc8] sm:$0xff] %v2149_v38 }
 0x295   :  { %v1864_v39 = vpop.f32.mrb[180].mxu1  ;;  %v2153_v40 = vpop.f32.mrb[180].mxu0 }
 0x296   :  { %v1865_v41 = vadd.f32 %v3568_v27, %v1864_v39  ;;  %v1866_v4 = vpop.f32.mrb[181].mxu1  ;;  %v2155_v18 = vpop.f32.mrb[181].mxu0 }
 0x297   :  { %v1867_v19 = vpop.f32.mrb[182].mxu1  ;;  %v2156_v22 = vpop.f32.mrb[182].mxu0 }
 0x298   :  { %v2154_v23 = vadd.f32 %v2153_v40, %v1865_v41  ;;  %v1868_v5 = vadd.f32 %v3568_v27, %v1867_v19  ;;  %v1869_v42 = vpop.f32.mrb[183].mxu1  ;;  %v2158_v47 = vpop.f32.mrb[183].mxu0 }
 0x29a   :  { %2330 = vst [vmem:[#allocation8 + $0xd0] sm:$0xff] %v2154_v23  ;;  %v2157_v48 = vadd.f32 %v2156_v22, %v1868_v5 }
 0x29c   :  { %2331 = vst [vmem:[#allocation8 + $0xd8] sm:$0xff] %v2157_v48 }
 0x29d   :  { %v1872_v49 = vpop.f32.mrb[184].mxu1  ;;  %v2161_v16 = vpop.f32.mrb[184].mxu0 }
 0x29e   :  { %v1873_v17 = vadd.f32 %v3568_v27, %v1872_v49  ;;  %v1874_v52 = vpop.f32.mrb[185].mxu1  ;;  %v2163_v55 = vpop.f32.mrb[185].mxu0 }
 0x29f   :  { %v1875_v56 = vpop.f32.mrb[186].mxu1  ;;  %v2164_v60 = vpop.f32.mrb[186].mxu0 }
 0x2a0   :  { %v2162_v61 = vadd.f32 %v2161_v16, %v1873_v17  ;;  %v1876_v53 = vadd.f32 %v3568_v27, %v1875_v56  ;;  %v1877_v57 = vpop.f32.mrb[187].mxu1  ;;  %v2166_v58 = vpop.f32.mrb[187].mxu0 }
 0x2a2   :  { %2332 = vst [vmem:[#allocation8 + $0xe0] sm:$0xff] %v2162_v61  ;;  %v2165_v62 = vadd.f32 %v2164_v60, %v1876_v53 }
 0x2a4   :  { %2333 = vst [vmem:[#allocation8 + $0xe8] sm:$0xff] %v2165_v62 }
 0x2a5   :  { %v1880_v63 = vpop.f32.mrb[188].mxu1  ;;  %v2169_v59 = vpop.f32.mrb[188].mxu0 }
 0x2a6   :  { %v1881_v1 = vadd.f32 %v3568_v27, %v1880_v63  ;;  %v1882_v7 = vpop.f32.mrb[189].mxu1  ;;  %v2171_v26 = vpop.f32.mrb[189].mxu0 }
 0x2a7   :  { %v1883_v31 = vpop.f32.mrb[190].mxu1  ;;  %v2172_v30 = vpop.f32.mrb[190].mxu0 }
 0x2a8   :  { %v2170_v6 = vadd.f32 %v2169_v59, %v1881_v1  ;;  %v1884_v2 = vadd.f32 %v3568_v27, %v1883_v31  ;;  %v1885_v3 = vpop.f32.mrb[191].mxu1  ;;  %v2174_v12 = vpop.f32.mrb[191].mxu0 }
 0x2aa   :  { %2334 = vst [vmem:[#allocation8 + $0xf0] sm:$0xff] %v2170_v6  ;;  %v2173_v32 = vadd.f32 %v2172_v30, %v1884_v2 }
 0x2ac   :  { %2335 = vst [vmem:[#allocation8 + $0xf8] sm:$0xff] %v2173_v32 }
 0x2ad   :  { %v1888_v13 = vpop.f32.mrb[192].mxu1  ;;  %v2177_v33 = vpop.f32.mrb[192].mxu0 }
 0x2ae   :  { %v1889_v8 = vadd.f32 %v3568_v27, %v1888_v13  ;;  %v1890_v9 = vpop.f32.mrb[193].mxu1  ;;  %v2179_v10 = vpop.f32.mrb[193].mxu0 }
 0x2af   :  { %v1891_v11 = vpop.f32.mrb[194].mxu1  ;;  %v2180_v28 = vpop.f32.mrb[194].mxu0 }
 0x2b0   :  { %v2178_v43 = vadd.f32 %v2177_v33, %v1889_v8  ;;  %v1892_v29 = vadd.f32 %v3568_v27, %v1891_v11  ;;  %v1893_v44 = vpop.f32.mrb[195].mxu1  ;;  %v2182_v14 = vpop.f32.mrb[195].mxu0 }
 0x2b2   :  { %2336 = vst [vmem:[#allocation8 + $0x100] sm:$0xff] %v2178_v43  ;;  %v2181_v15 = vadd.f32 %v2180_v28, %v1892_v29 }
 0x2b4   :  { %2337 = vst [vmem:[#allocation8 + $0x108] sm:$0xff] %v2181_v15 }
 0x2b5   :  { %v1896_v20 = vpop.f32.mrb[196].mxu1  ;;  %v2185_v21 = vpop.f32.mrb[196].mxu0 }
 0x2b6   :  { %v1897_v0 = vadd.f32 %v3568_v27, %v1896_v20  ;;  %v1898_v54 = vpop.f32.mrb[197].mxu1  ;;  %v2187_v24 = vpop.f32.mrb[197].mxu0 }
 0x2b7   :  { %v1899_v25 = vpop.f32.mrb[198].mxu1  ;;  %v2188_v36 = vpop.f32.mrb[198].mxu0 }
 0x2b8   :  { %v2186_v45 = vadd.f32 %v2185_v21, %v1897_v0  ;;  %v1900_v46 = vadd.f32 %v3568_v27, %v1899_v25  ;;  %v1901_v50 = vpop.f32.mrb[199].mxu1  ;;  %v2190_v51 = vpop.f32.mrb[199].mxu0 }
 0x2ba   :  { %2338 = vst [vmem:[#allocation8 + $0x110] sm:$0xff] %v2186_v45  ;;  %v2189_v37 = vadd.f32 %v2188_v36, %v1900_v46 }
 0x2bc   :  { %2339 = vst [vmem:[#allocation8 + $0x118] sm:$0xff] %v2189_v37 }
 0x2bd   :  { %v1904_v34 = vpop.f32.mrb[200].mxu1  ;;  %v2193_v35 = vpop.f32.mrb[200].mxu0 }
 0x2be   :  { %v1905_v38 = vadd.f32 %v3568_v27, %v1904_v34  ;;  %v1906_v39 = vpop.f32.mrb[201].mxu1  ;;  %v2195_v40 = vpop.f32.mrb[201].mxu0 }
 0x2bf   :  { %v1907_v41 = vpop.f32.mrb[202].mxu1  ;;  %v2196_v4 = vpop.f32.mrb[202].mxu0 }
 0x2c0   :  { %v2194_v18 = vadd.f32 %v2193_v35, %v1905_v38  ;;  %v1908_v19 = vadd.f32 %v3568_v27, %v1907_v41  ;;  %v1909_v22 = vpop.f32.mrb[203].mxu1  ;;  %v2198_v23 = vpop.f32.mrb[203].mxu0 }
 0x2c2   :  { %2340 = vst [vmem:[#allocation8 + $0x120] sm:$0xff] %v2194_v18  ;;  %v2197_v5 = vadd.f32 %v2196_v4, %v1908_v19 }
 0x2c4   :  { %2341 = vst [vmem:[#allocation8 + $0x128] sm:$0xff] %v2197_v5 }
 0x2c5   :  { %v1912_v42 = vpop.f32.mrb[204].mxu1  ;;  %v2201_v47 = vpop.f32.mrb[204].mxu0 }
 0x2c6   :  { %v1913_v48 = vadd.f32 %v3568_v27, %v1912_v42  ;;  %v1914_v49 = vpop.f32.mrb[205].mxu1  ;;  %v2203_v16 = vpop.f32.mrb[205].mxu0 }
 0x2c7   :  { %v1915_v17 = vpop.f32.mrb[206].mxu1  ;;  %v2204_v52 = vpop.f32.mrb[206].mxu0 }
 0x2c8   :  { %v2202_v55 = vadd.f32 %v2201_v47, %v1913_v48  ;;  %v1916_v56 = vadd.f32 %v3568_v27, %v1915_v17  ;;  %v1917_v60 = vpop.f32.mrb[207].mxu1  ;;  %v2206_v61 = vpop.f32.mrb[207].mxu0 }
 0x2ca   :  { %2342 = vst [vmem:[#allocation8 + $0x130] sm:$0xff] %v2202_v55  ;;  %v2205_v53 = vadd.f32 %v2204_v52, %v1916_v56 }
 0x2cc   :  { %2343 = vst [vmem:[#allocation8 + $0x138] sm:$0xff] %v2205_v53 }
 0x2cd   :  { %v1920_v57 = vpop.f32.mrb[208].mxu1  ;;  %v2209_v58 = vpop.f32.mrb[208].mxu0 }
 0x2ce   :  { %v1921_v62 = vadd.f32 %v3568_v27, %v1920_v57  ;;  %v1922_v63 = vpop.f32.mrb[209].mxu1  ;;  %v2211_v59 = vpop.f32.mrb[209].mxu0 }
 0x2cf   :  { %v1923_v1 = vpop.f32.mrb[210].mxu1  ;;  %v2212_v7 = vpop.f32.mrb[210].mxu0 }
 0x2d0   :  { %v2210_v26 = vadd.f32 %v2209_v58, %v1921_v62  ;;  %v1924_v31 = vadd.f32 %v3568_v27, %v1923_v1  ;;  %v1925_v30 = vpop.f32.mrb[211].mxu1  ;;  %v2214_v6 = vpop.f32.mrb[211].mxu0 }
 0x2d2   :  { %2344 = vst [vmem:[#allocation8 + $0x140] sm:$0xff] %v2210_v26  ;;  %v2213_v2 = vadd.f32 %v2212_v7, %v1924_v31 }
 0x2d4   :  { %2345 = vst [vmem:[#allocation8 + $0x148] sm:$0xff] %v2213_v2 }
 0x2d5   :  { %v1928_v3 = vpop.f32.mrb[212].mxu1  ;;  %v2217_v12 = vpop.f32.mrb[212].mxu0 }
 0x2d6   :  { %v1929_v32 = vadd.f32 %v3568_v27, %v1928_v3  ;;  %v1930_v13 = vpop.f32.mrb[213].mxu1  ;;  %v2219_v33 = vpop.f32.mrb[213].mxu0 }
 0x2d7   :  { %v1931_v8 = vpop.f32.mrb[214].mxu1  ;;  %v2220_v9 = vpop.f32.mrb[214].mxu0 }
 0x2d8   :  { %v2218_v10 = vadd.f32 %v2217_v12, %v1929_v32  ;;  %v1932_v11 = vadd.f32 %v3568_v27, %v1931_v8  ;;  %v1933_v28 = vpop.f32.mrb[215].mxu1  ;;  %v2222_v43 = vpop.f32.mrb[215].mxu0 }
 0x2da   :  { %2346 = vst [vmem:[#allocation8 + $0x150] sm:$0xff] %v2218_v10  ;;  %v2221_v29 = vadd.f32 %v2220_v9, %v1932_v11 }
 0x2dc   :  { %2347 = vst [vmem:[#allocation8 + $0x158] sm:$0xff] %v2221_v29 }
 0x2dd   :  { %v1936_v44 = vpop.f32.mrb[216].mxu1  ;;  %v2225_v14 = vpop.f32.mrb[216].mxu0 }
 0x2de   :  { %v1937_v15 = vadd.f32 %v3568_v27, %v1936_v44  ;;  %v1938_v20 = vpop.f32.mrb[217].mxu1  ;;  %v2227_v21 = vpop.f32.mrb[217].mxu0 }
 0x2df   :  { %v1939_v0 = vpop.f32.mrb[218].mxu1  ;;  %v2228_v54 = vpop.f32.mrb[218].mxu0 }
 0x2e0   :  { %v2226_v24 = vadd.f32 %v2225_v14, %v1937_v15  ;;  %v1940_v25 = vadd.f32 %v3568_v27, %v1939_v0  ;;  %v1941_v36 = vpop.f32.mrb[219].mxu1  ;;  %v2230_v45 = vpop.f32.mrb[219].mxu0 }
 0x2e2   :  { %2348 = vst [vmem:[#allocation8 + $0x160] sm:$0xff] %v2226_v24  ;;  %v2229_v46 = vadd.f32 %v2228_v54, %v1940_v25 }
 0x2e4   :  { %2349 = vst [vmem:[#allocation8 + $0x168] sm:$0xff] %v2229_v46 }
 0x2e5   :  { %v1944_v50 = vpop.f32.mrb[220].mxu1  ;;  %v2233_v51 = vpop.f32.mrb[220].mxu0 }
 0x2e6   :  { %v1945_v37 = vadd.f32 %v3568_v27, %v1944_v50  ;;  %v1946_v34 = vpop.f32.mrb[221].mxu1  ;;  %v2235_v35 = vpop.f32.mrb[221].mxu0 }
 0x2e7   :  { %v1947_v38 = vpop.f32.mrb[222].mxu1  ;;  %v2236_v39 = vpop.f32.mrb[222].mxu0 }
 0x2e8   :  { %v2234_v40 = vadd.f32 %v2233_v51, %v1945_v37  ;;  %v1948_v41 = vadd.f32 %v3568_v27, %v1947_v38  ;;  %v1949_v4 = vpop.f32.mrb[223].mxu1  ;;  %v2238_v18 = vpop.f32.mrb[223].mxu0 }
 0x2ea   :  { %2350 = vst [vmem:[#allocation8 + $0x170] sm:$0xff] %v2234_v40  ;;  %v2237_v19 = vadd.f32 %v2236_v39, %v1948_v41 }
 0x2ec   :  { %2351 = vst [vmem:[#allocation8 + $0x178] sm:$0xff] %v2237_v19 }
 0x2ed   :  { %v1952_v22 = vpop.f32.mrb[224].mxu1  ;;  %v2241_v23 = vpop.f32.mrb[224].mxu0 }
 0x2ee   :  { %v1953_v5 = vadd.f32 %v3568_v27, %v1952_v22  ;;  %v1954_v42 = vpop.f32.mrb[225].mxu1  ;;  %v2243_v47 = vpop.f32.mrb[225].mxu0 }
 0x2ef   :  { %v1955_v48 = vpop.f32.mrb[226].mxu1  ;;  %v2244_v49 = vpop.f32.mrb[226].mxu0 }
 0x2f0   :  { %v2242_v16 = vadd.f32 %v2241_v23, %v1953_v5  ;;  %v1956_v17 = vadd.f32 %v3568_v27, %v1955_v48  ;;  %v1957_v52 = vpop.f32.mrb[227].mxu1  ;;  %v2246_v55 = vpop.f32.mrb[227].mxu0 }
 0x2f2   :  { %2352 = vst [vmem:[#allocation8 + $0x180] sm:$0xff] %v2242_v16  ;;  %v2245_v56 = vadd.f32 %v2244_v49, %v1956_v17 }
 0x2f4   :  { %2353 = vst [vmem:[#allocation8 + $0x188] sm:$0xff] %v2245_v56 }
 0x2f5   :  { %v1960_v60 = vpop.f32.mrb[228].mxu1  ;;  %v2249_v61 = vpop.f32.mrb[228].mxu0 }
 0x2f6   :  { %v1961_v53 = vadd.f32 %v3568_v27, %v1960_v60  ;;  %v1962_v57 = vpop.f32.mrb[229].mxu1  ;;  %v2251_v58 = vpop.f32.mrb[229].mxu0 }
 0x2f7   :  { %v1963_v62 = vpop.f32.mrb[230].mxu1  ;;  %v2252_v63 = vpop.f32.mrb[230].mxu0 }
 0x2f8   :  { %v2250_v59 = vadd.f32 %v2249_v61, %v1961_v53  ;;  %v1964_v1 = vadd.f32 %v3568_v27, %v1963_v62  ;;  %v1965_v7 = vpop.f32.mrb[231].mxu1  ;;  %v2254_v26 = vpop.f32.mrb[231].mxu0 }
 0x2fa   :  { %2354 = vst [vmem:[#allocation8 + $0x190] sm:$0xff] %v2250_v59  ;;  %v2253_v31 = vadd.f32 %v2252_v63, %v1964_v1 }
 0x2fc   :  { %2355 = vst [vmem:[#allocation8 + $0x198] sm:$0xff] %v2253_v31 }
 0x2fd   :  { %v1968_v30 = vpop.f32.mrb[232].mxu1  ;;  %v2257_v6 = vpop.f32.mrb[232].mxu0 }
 0x2fe   :  { %v1969_v2 = vadd.f32 %v3568_v27, %v1968_v30  ;;  %v1970_v3 = vpop.f32.mrb[233].mxu1  ;;  %v2259_v12 = vpop.f32.mrb[233].mxu0 }
 0x2ff   :  { %v1971_v32 = vpop.f32.mrb[234].mxu1  ;;  %v2260_v13 = vpop.f32.mrb[234].mxu0 }
 0x300   :  { %v2258_v33 = vadd.f32 %v2257_v6, %v1969_v2  ;;  %v1972_v8 = vadd.f32 %v3568_v27, %v1971_v32  ;;  %v1973_v9 = vpop.f32.mrb[235].mxu1  ;;  %v2262_v10 = vpop.f32.mrb[235].mxu0 }
 0x302   :  { %2356 = vst [vmem:[#allocation8 + $0x1a0] sm:$0xff] %v2258_v33  ;;  %v2261_v11 = vadd.f32 %v2260_v13, %v1972_v8 }
 0x304   :  { %2357 = vst [vmem:[#allocation8 + $0x1a8] sm:$0xff] %v2261_v11 }
 0x305   :  { %v1976_v28 = vpop.f32.mrb[236].mxu1  ;;  %v2265_v43 = vpop.f32.mrb[236].mxu0 }
 0x306   :  { %v1977_v29 = vadd.f32 %v3568_v27, %v1976_v28  ;;  %v1978_v44 = vpop.f32.mrb[237].mxu1  ;;  %v2267_v14 = vpop.f32.mrb[237].mxu0 }
 0x307   :  { %v1979_v15 = vpop.f32.mrb[238].mxu1  ;;  %v2268_v20 = vpop.f32.mrb[238].mxu0 }
 0x308   :  { %v2266_v21 = vadd.f32 %v2265_v43, %v1977_v29  ;;  %v1980_v0 = vadd.f32 %v3568_v27, %v1979_v15  ;;  %v1981_v54 = vpop.f32.mrb[239].mxu1  ;;  %v2270_v24 = vpop.f32.mrb[239].mxu0 }
 0x30a   :  { %2358 = vst [vmem:[#allocation8 + $0x1b0] sm:$0xff] %v2266_v21  ;;  %v2269_v25 = vadd.f32 %v2268_v20, %v1980_v0 }
 0x30c   :  { %2359 = vst [vmem:[#allocation8 + $0x1b8] sm:$0xff] %v2269_v25 }
 0x30d   :  { %v1984_v36 = vpop.f32.mrb[240].mxu1  ;;  %v2273_v45 = vpop.f32.mrb[240].mxu0 }
 0x30e   :  { %v1985_v46 = vadd.f32 %v3568_v27, %v1984_v36  ;;  %v1986_v50 = vpop.f32.mrb[241].mxu1  ;;  %v2275_v51 = vpop.f32.mrb[241].mxu0 }
 0x30f   :  { %v1987_v37 = vpop.f32.mrb[242].mxu1  ;;  %v2276_v34 = vpop.f32.mrb[242].mxu0 }
 0x310   :  { %v2274_v35 = vadd.f32 %v2273_v45, %v1985_v46  ;;  %v1988_v38 = vadd.f32 %v3568_v27, %v1987_v37  ;;  %v1989_v39 = vpop.f32.mrb[243].mxu1  ;;  %v2278_v40 = vpop.f32.mrb[243].mxu0 }
 0x312   :  { %2360 = vst [vmem:[#allocation8 + $0x1c0] sm:$0xff] %v2274_v35  ;;  %v2277_v41 = vadd.f32 %v2276_v34, %v1988_v38 }
 0x314   :  { %2361 = vst [vmem:[#allocation8 + $0x1c8] sm:$0xff] %v2277_v41 }
 0x315   :  { %v1992_v4 = vpop.f32.mrb[244].mxu1  ;;  %v2281_v18 = vpop.f32.mrb[244].mxu0 }
 0x316   :  { %v1993_v19 = vadd.f32 %v3568_v27, %v1992_v4  ;;  %v1994_v22 = vpop.f32.mrb[245].mxu1  ;;  %v2283_v23 = vpop.f32.mrb[245].mxu0 }
 0x317   :  { %v1995_v5 = vpop.f32.mrb[246].mxu1  ;;  %v2284_v42 = vpop.f32.mrb[246].mxu0 }
 0x318   :  { %v2282_v47 = vadd.f32 %v2281_v18, %v1993_v19  ;;  %v1996_v48 = vadd.f32 %v3568_v27, %v1995_v5  ;;  %v1997_v49 = vpop.f32.mrb[247].mxu1  ;;  %v2286_v16 = vpop.f32.mrb[247].mxu0 }
 0x31a   :  { %2362 = vst [vmem:[#allocation8 + $0x1d0] sm:$0xff] %v2282_v47  ;;  %v2285_v17 = vadd.f32 %v2284_v42, %v1996_v48 }
 0x31c   :  { %2363 = vst [vmem:[#allocation8 + $0x1d8] sm:$0xff] %v2285_v17 }
 0x31d   :  { %v2000_v52 = vpop.f32.mrb[248].mxu1  ;;  %v2289_v55 = vpop.f32.mrb[248].mxu0 }
 0x31e   :  { %v2001_v56 = vadd.f32 %v3568_v27, %v2000_v52  ;;  %v2002_v60 = vpop.f32.mrb[249].mxu1  ;;  %v2291_v61 = vpop.f32.mrb[249].mxu0 }
 0x31f   :  { %v2003_v53 = vpop.f32.mrb[250].mxu1  ;;  %v2292_v57 = vpop.f32.mrb[250].mxu0 }
 0x320   :  { %v2290_v58 = vadd.f32 %v2289_v55, %v2001_v56  ;;  %v2004_v62 = vadd.f32 %v3568_v27, %v2003_v53  ;;  %v2005_v63 = vpop.f32.mrb[251].mxu1  ;;  %v2294_v59 = vpop.f32.mrb[251].mxu0 }
 0x322   :  { %2364 = vst [vmem:[#allocation8 + $0x1e0] sm:$0xff] %v2290_v58  ;;  %v2293_v1 = vadd.f32 %v2292_v57, %v2004_v62 }
 0x324   :  { %2365 = vst [vmem:[#allocation8 + $0x1e8] sm:$0xff] %v2293_v1 }
 0x325   :  { %v2008_v7 = vpop.f32.mrb[252].mxu1  ;;  %v2297_v26 = vpop.f32.mrb[252].mxu0 }
 0x326   :  { %v2009_v31 = vadd.f32 %v3568_v27, %v2008_v7  ;;  %v2010_v30 = vpop.f32.mrb[253].mxu1  ;;  %v2299_v6 = vpop.f32.mrb[253].mxu0 }
 0x327   :  { %v2011_v2 = vpop.f32.mrb[254].mxu1  ;;  %v2300_v3 = vpop.f32.mrb[254].mxu0 }
 0x328   :  { %v2298_v12 = vadd.f32 %v2297_v26, %v2009_v31  ;;  %v2012_v32 = vadd.f32 %v3568_v27, %v2011_v2  ;;  %v2013_v13 = vpop.f32.mrb[255].mxu1  ;;  %v2302_v33 = vpop.f32.mrb[255].mxu0 }
 0x32a   :  { %2366 = vst [vmem:[#allocation8 + $0x1f0] sm:$0xff] %v2298_v12  ;;  %v2301_v8 = vadd.f32 %v2300_v3, %v2012_v32 }
 0x32c   :  { %2367 = vst [vmem:[#allocation8 + $0x1f8] sm:$0xff] %v2301_v8 }
 0x32d   :  { %2747 = shalt.err (!%p2744_p0)
}
 0x32e   :  { %s2748_s14 = scalar_lea.hbm %s3680_s5, 8192 }
 0x32f   :  { %p2749_p1 = scmp.ne.s32.totalorder %s3680_s5, %s2748_s14  ;;  %p2752_p2 = scmp.lt.u32.totalorder %s2748_s14, %s3680_s5 }
 0x331   :  { %p2754_p3 = pnand %p2752_p2, %p2749_p1 }
 0x333   :  { %2757 = shalt.err (!%p2754_p3)
}
 0x334   :  { %2379 = dma.vmem_to_hbm [thread:$0]  %s2374_s10, 8192, %s3680_s5, [#allocation4], %s2768_s1, %s2768_s1, %s2769_s17  }
 0x335   :  { %2762 = dma.done.wait [#allocation4], 8192  }
 0x336   :  { %2763 = vsyncadd [#allocation4], 4294959104 }
 0x337   :  { %2383 = vsyncpa [#allocation3], 1 }
 0x338   :  { %2384 = vsyncpa [#allocation6], 1 }
 0x339   :  { %2385 = vsyncpa [#allocation4], 1 }

</bundles_post_ra>
